<compile_context>
chip_gen: v7x
topology: tpu7x:2x2x1
jax: 0.10.0
libtpu: 0.0.40
codegen_flags: <defaults>
</compile_context>

<pallas_src>
import functools

import jax
import jax.numpy as jnp
from jax import lax
from jax.experimental import pallas as pl
from jax.experimental.pallas import tpu as pltpu


def _recip(x, newton_steps=1):
    """EUP approx reciprocal + Newton-Raphson refinement (off the VPU path)."""
    r = pl.reciprocal(x, approx=True)
    for _ in range(newton_steps):
        r = r * (2.0 - x * r)
    return r


def _portfolio_kernel(returns_ref, out_ref, *, risk_aversion):
    # returns_ref: (T, N, Bt) block — portfolio index on the lane axis.
    # out_ref:     (N, Bt) block — lane-dense output slab.
    T, N, Bt = returns_ref.shape
    x = returns_ref[...].astype(jnp.float32)                       # (T, N, Bt)

    # mean over observations (torch: returns.mean(dim=0))
    mean = jnp.sum(x, axis=0) * (1.0 / T)                          # (N, Bt)

    # centered returns
    xc = x - mean[None, :, :]                                      # (T, N, Bt)

    # covariance (torch.cov default correction=1 -> /(T-1)), batch-last layout.
    # Built row-by-row on the VPU; N is compile-time static and small.
    inv_tm1 = 1.0 / (T - 1)
    cov_rows = []
    for i in range(N):
        cov_i = jnp.sum(xc[:, i:i + 1, :] * xc, axis=0) * inv_tm1  # (N, Bt)
        cov_rows.append(cov_i[None])                               # (1, N, Bt)
    cov = jnp.concatenate(cov_rows, axis=0)                        # (N, N, Bt)

    # ridge: A = cov + 1e-6 * I (identity broadcast across the batch lanes)
    ri = lax.broadcasted_iota(jnp.int32, (N, N, Bt), 0)
    ci = lax.broadcasted_iota(jnp.int32, (N, N, Bt), 1)
    eye = (ri == ci).astype(jnp.float32)                           # (N, N, Bt)
    a_work = cov + 1e-6 * eye

    # Solve A x = mean per lane (A symmetric SPD) via fully-unrolled
    # Gauss-Jordan, carrying the RHS alongside A: no explicit inverse,
    # no second inv@mean matmul.  k static => all slices are static.
    mvec = mean                                                    # (N, Bt)
    for k in range(N):
        pivot = a_work[k, k:k + 1, :]                              # (1, Bt)
        inv_p = _recip(pivot, newton_steps=2)                      # (1, Bt)
        row_adj = a_work[k] - eye[k]                               # (N, Bt)
        a_col = a_work[:, k:k + 1, :] * inv_p[None, :, :]          # (N, 1, Bt)
        m_k = mvec[k:k + 1, :] * inv_p                             # (1, Bt)
        a_work = a_work - a_col * row_adj[None, :, :]              # rank-1 update
        mvec = mvec - m_k * row_adj                                # (N, Bt)

    ow = mvec * (1.0 / risk_aversion)                              # (N, Bt)

    # softmax over assets (sublane axis), independently per lane / portfolio
    m = jnp.max(ow, axis=0, keepdims=True)                         # (1, Bt)
    e = jnp.exp(ow - m)                                            # (N, Bt)
    denom = jnp.sum(e, axis=0, keepdims=True)                      # (1, Bt)
    out_ref[...] = e * _recip(denom)                               # (N, Bt)


def portfolio_optimizer_forward_batched(returns_b, risk_aversion=0.1, block_b=128):
    """returns_b: (B, T, N) -> (B, N) softmax-normalized optimal weights."""
    B, T, N = returns_b.shape
    Bt = int(block_b)
    Bp = pl.cdiv(B, Bt) * Bt

    # Batch-last layout: (T, N, B).  Cheap XLA transpose in the wrapper gives
    # lane-dense DMAs and lane-dense in-kernel ops.  Keep the caller's dtype
    # through the transpose/pad; the f32 cast happens inside the kernel.
    r = jnp.transpose(returns_b, (1, 2, 0))                        # (T, N, B)
    if Bp != B:
        # zero-return padding is SPD-safe: cov=0 + ridge, solution 0, uniform softmax
        r = jnp.pad(r, ((0, 0), (0, 0), (0, Bp - B)))

    itemsize = jnp.dtype(returns_b.dtype).itemsize
    flops_per = 2 * N * N * T + 2 * N * N * N + 8 * N              # rough per-portfolio
    out = pl.pallas_call(
        functools.partial(_portfolio_kernel, risk_aversion=float(risk_aversion)),
        out_shape=jax.ShapeDtypeStruct((N, Bp), jnp.float32),
        grid=(Bp // Bt,),
        in_specs=[pl.BlockSpec((T, N, Bt), lambda b: (0, 0, b))],
        out_specs=pl.BlockSpec((N, Bt), lambda b: (0, b)),
        compiler_params=pltpu.CompilerParams(
            dimension_semantics=("parallel",)),                    # dual-TC on v7x when grid > 1
        cost_estimate=pl.CostEstimate(
            flops=int(Bp) * flops_per,
            transcendentals=int(Bp) * (3 * N + 2),
            bytes_accessed=int(Bp) * T * N * itemsize + int(Bp) * N * 4),
    )(r)
    return out.T[:B]                                               # (B, N)


def portfolio_optimizer_forward(returns, risk_aversion=0.1):
    """returns: (T, N) -> (N,) — matches PortfolioOptimizer.forward."""
    return portfolio_optimizer_forward_batched(returns[None], risk_aversion)[0]


if __name__ == "__main__":
    key = jax.random.PRNGKey(0)
    k_param, k_ret, k_batch, k_big = jax.random.split(key, 4)

    num_assets = 8   # N
    num_obs = 16     # T

    # nn.Parameter(torch.randn(num_assets)) — deterministic init; NOTE: unused in
    # forward, exactly like the PyTorch module.
    weights_param = jax.random.normal(k_param, (num_assets,), dtype=jnp.float32)

    returns = jax.random.normal(k_ret, (num_obs, num_assets), dtype=jnp.float32)

    # reference in plain JAX
    def ref_forward(r, ra=0.1):
        mean = r.mean(axis=0)
        cov = jnp.cov(r.T)                                   # (N, N), /(T-1)
        inv = jnp.linalg.inv(cov + 1e-6 * jnp.eye(r.shape[1], dtype=jnp.float32))
        return jax.nn.softmax(inv @ mean / ra)

    # single-portfolio path (module-equivalent forward)
    w = jax.block_until_ready(portfolio_optimizer_forward(returns, risk_aversion=0.1))
    ref = ref_forward(returns)
    assert w.shape == (num_assets,)
    assert jnp.allclose(w, ref, atol=2e-3, rtol=2e-3), (w, ref)

    # small batched path (single lane-dense block)
    B = 4
    returns_b = jax.random.normal(k_batch, (B, num_obs, num_assets), dtype=jnp.float32)
    wb = jax.block_until_ready(portfolio_optimizer_forward_batched(returns_b, 0.1))
    ref_b = jax.vmap(ref_forward)(returns_b)
    assert wb.shape == (B, num_assets)
    assert jnp.allclose(wb, ref_b, atol=2e-3, rtol=2e-3), (wb, ref_b)

    # larger batch exercising grid > 1 + padding (200 -> 2 blocks of 128)
    B2 = 200
    returns_b2 = jax.random.normal(k_big, (B2, num_obs, num_assets), dtype=jnp.float32)
    wb2 = jax.block_until_ready(portfolio_optimizer_forward_batched(returns_b2, 0.1))
    ref_b2 = jax.vmap(ref_forward)(returns_b2)
    assert wb2.shape == (B2, num_assets)
    assert jnp.allclose(wb2, ref_b2, atol=2e-3, rtol=2e-3)

    print("KERNEL_OK")
</pallas_src>

<mosaic_0001>
module attributes {stable_mosaic.version = 11 : i64} {
  func.func @_portfolio_kernel(%arg0: i32, %arg1: memref<16x8x128xf32, #tpu.memory_space<vmem>>, %arg2: memref<8x128xf32, #tpu.memory_space<vmem>>) attributes {dimension_semantics = [#tpu.dimension_semantics<parallel>], iteration_bounds = array<i64: 1>, scalar_prefetch = 0 : i64, scratch_operands = 0 : i64, tpu.core_type = #tpu.core_type<tc>, window_params = [{transform_indices = @transform_0, window_bounds = array<i64: 16, 8, 128>}, {transform_indices = @transform_1, window_bounds = array<i64: 8, 128>}]} {
    %c0 = arith.constant 0 : index
    %c0_0 = arith.constant 0 : index
    %c0_1 = arith.constant 0 : index
    %0 = vector.load %arg1[%c0, %c0_0, %c0_1] : memref<16x8x128xf32, #tpu.memory_space<vmem>>, vector<16x8x128xf32>
    %cst = arith.constant dense<0.000000e+00> : vector<8x128xf32>
    %1 = vector.multi_reduction <add>, %0, %cst [0] : vector<16x8x128xf32> to vector<8x128xf32>
    %cst_2 = arith.constant 6.250000e-02 : f32
    %2 = vector.broadcast %cst_2 : f32 to vector<8x128xf32>
    %3 = arith.mulf %1, %2 : vector<8x128xf32>
    %4 = vector.shape_cast %3 : vector<8x128xf32> to vector<1x8x128xf32>
    %5 = vector.broadcast %4 : vector<1x8x128xf32> to vector<16x8x128xf32>
    %6 = arith.subf %0, %5 : vector<16x8x128xf32>
    %7 = vector.extract_strided_slice %6 {offsets = [0, 0, 0], sizes = [16, 1, 128], strides = [1, 1, 1]} : vector<16x8x128xf32> to vector<16x1x128xf32>
    %8 = vector.broadcast %7 : vector<16x1x128xf32> to vector<16x8x128xf32>
    %9 = arith.mulf %8, %6 : vector<16x8x128xf32>
    %cst_3 = arith.constant dense<0.000000e+00> : vector<8x128xf32>
    %10 = vector.multi_reduction <add>, %9, %cst_3 [0] : vector<16x8x128xf32> to vector<8x128xf32>
    %cst_4 = arith.constant 0.0666666701 : f32
    %11 = vector.broadcast %cst_4 : f32 to vector<8x128xf32>
    %12 = arith.mulf %10, %11 : vector<8x128xf32>
    %13 = vector.shape_cast %12 : vector<8x128xf32> to vector<1x8x128xf32>
    %14 = vector.extract_strided_slice %6 {offsets = [0, 1, 0], sizes = [16, 1, 128], strides = [1, 1, 1]} : vector<16x8x128xf32> to vector<16x1x128xf32>
    %15 = vector.broadcast %14 : vector<16x1x128xf32> to vector<16x8x128xf32>
    %16 = arith.mulf %15, %6 : vector<16x8x128xf32>
    %cst_5 = arith.constant dense<0.000000e+00> : vector<8x128xf32>
    %17 = vector.multi_reduction <add>, %16, %cst_5 [0] : vector<16x8x128xf32> to vector<8x128xf32>
    %cst_6 = arith.constant 0.0666666701 : f32
    %18 = vector.broadcast %cst_6 : f32 to vector<8x128xf32>
    %19 = arith.mulf %17, %18 : vector<8x128xf32>
    %20 = vector.shape_cast %19 : vector<8x128xf32> to vector<1x8x128xf32>
    %21 = vector.extract_strided_slice %6 {offsets = [0, 2, 0], sizes = [16, 1, 128], strides = [1, 1, 1]} : vector<16x8x128xf32> to vector<16x1x128xf32>
    %22 = vector.broadcast %21 : vector<16x1x128xf32> to vector<16x8x128xf32>
    %23 = arith.mulf %22, %6 : vector<16x8x128xf32>
    %cst_7 = arith.constant dense<0.000000e+00> : vector<8x128xf32>
    %24 = vector.multi_reduction <add>, %23, %cst_7 [0] : vector<16x8x128xf32> to vector<8x128xf32>
    %cst_8 = arith.constant 0.0666666701 : f32
    %25 = vector.broadcast %cst_8 : f32 to vector<8x128xf32>
    %26 = arith.mulf %24, %25 : vector<8x128xf32>
    %27 = vector.shape_cast %26 : vector<8x128xf32> to vector<1x8x128xf32>
    %28 = vector.extract_strided_slice %6 {offsets = [0, 3, 0], sizes = [16, 1, 128], strides = [1, 1, 1]} : vector<16x8x128xf32> to vector<16x1x128xf32>
    %29 = vector.broadcast %28 : vector<16x1x128xf32> to vector<16x8x128xf32>
    %30 = arith.mulf %29, %6 : vector<16x8x128xf32>
    %cst_9 = arith.constant dense<0.000000e+00> : vector<8x128xf32>
    %31 = vector.multi_reduction <add>, %30, %cst_9 [0] : vector<16x8x128xf32> to vector<8x128xf32>
    %cst_10 = arith.constant 0.0666666701 : f32
    %32 = vector.broadcast %cst_10 : f32 to vector<8x128xf32>
    %33 = arith.mulf %31, %32 : vector<8x128xf32>
    %34 = vector.shape_cast %33 : vector<8x128xf32> to vector<1x8x128xf32>
    %35 = vector.extract_strided_slice %6 {offsets = [0, 4, 0], sizes = [16, 1, 128], strides = [1, 1, 1]} : vector<16x8x128xf32> to vector<16x1x128xf32>
    %36 = vector.broadcast %35 : vector<16x1x128xf32> to vector<16x8x128xf32>
    %37 = arith.mulf %36, %6 : vector<16x8x128xf32>
    %cst_11 = arith.constant dense<0.000000e+00> : vector<8x128xf32>
    %38 = vector.multi_reduction <add>, %37, %cst_11 [0] : vector<16x8x128xf32> to vector<8x128xf32>
    %cst_12 = arith.constant 0.0666666701 : f32
    %39 = vector.broadcast %cst_12 : f32 to vector<8x128xf32>
    %40 = arith.mulf %38, %39 : vector<8x128xf32>
    %41 = vector.shape_cast %40 : vector<8x128xf32> to vector<1x8x128xf32>
    %42 = vector.extract_strided_slice %6 {offsets = [0, 5, 0], sizes = [16, 1, 128], strides = [1, 1, 1]} : vector<16x8x128xf32> to vector<16x1x128xf32>
    %43 = vector.broadcast %42 : vector<16x1x128xf32> to vector<16x8x128xf32>
    %44 = arith.mulf %43, %6 : vector<16x8x128xf32>
    %cst_13 = arith.constant dense<0.000000e+00> : vector<8x128xf32>
    %45 = vector.multi_reduction <add>, %44, %cst_13 [0] : vector<16x8x128xf32> to vector<8x128xf32>
    %cst_14 = arith.constant 0.0666666701 : f32
    %46 = vector.broadcast %cst_14 : f32 to vector<8x128xf32>
    %47 = arith.mulf %45, %46 : vector<8x128xf32>
    %48 = vector.shape_cast %47 : vector<8x128xf32> to vector<1x8x128xf32>
    %49 = vector.extract_strided_slice %6 {offsets = [0, 6, 0], sizes = [16, 1, 128], strides = [1, 1, 1]} : vector<16x8x128xf32> to vector<16x1x128xf32>
    %50 = vector.broadcast %49 : vector<16x1x128xf32> to vector<16x8x128xf32>
    %51 = arith.mulf %50, %6 : vector<16x8x128xf32>
    %cst_15 = arith.constant dense<0.000000e+00> : vector<8x128xf32>
    %52 = vector.multi_reduction <add>, %51, %cst_15 [0] : vector<16x8x128xf32> to vector<8x128xf32>
    %cst_16 = arith.constant 0.0666666701 : f32
    %53 = vector.broadcast %cst_16 : f32 to vector<8x128xf32>
    %54 = arith.mulf %52, %53 : vector<8x128xf32>
    %55 = vector.shape_cast %54 : vector<8x128xf32> to vector<1x8x128xf32>
    %56 = vector.extract_strided_slice %6 {offsets = [0, 7, 0], sizes = [16, 1, 128], strides = [1, 1, 1]} : vector<16x8x128xf32> to vector<16x1x128xf32>
    %57 = vector.broadcast %56 : vector<16x1x128xf32> to vector<16x8x128xf32>
    %58 = arith.mulf %57, %6 : vector<16x8x128xf32>
    %cst_17 = arith.constant dense<0.000000e+00> : vector<8x128xf32>
    %59 = vector.multi_reduction <add>, %58, %cst_17 [0] : vector<16x8x128xf32> to vector<8x128xf32>
    %cst_18 = arith.constant 0.0666666701 : f32
    %60 = vector.broadcast %cst_18 : f32 to vector<8x128xf32>
    %61 = arith.mulf %59, %60 : vector<8x128xf32>
    %62 = vector.shape_cast %61 : vector<8x128xf32> to vector<1x8x128xf32>
    %63 = tpu.concatenate %13, %20, %27, %34, %41, %48, %55, %62 in 0 : vector<1x8x128xf32>, vector<1x8x128xf32>, vector<1x8x128xf32>, vector<1x8x128xf32>, vector<1x8x128xf32>, vector<1x8x128xf32>, vector<1x8x128xf32>, vector<1x8x128xf32> -> vector<8x8x128xf32>
    %64 = tpu.iota {dimensions = array<i32: 0>} : vector<8x8x128xi32>
    %65 = tpu.iota {dimensions = array<i32: 1>} : vector<8x8x128xi32>
    %66 = arith.cmpi eq, %64, %65 : vector<8x8x128xi32>
    %67 = arith.extui %66 : vector<8x8x128xi1> to vector<8x8x128xi32>
    %68 = arith.sitofp %67 : vector<8x8x128xi32> to vector<8x8x128xf32>
    %cst_19 = arith.constant 9.99999997E-7 : f32
    %69 = vector.broadcast %cst_19 : f32 to vector<8x8x128xf32>
    %70 = arith.mulf %69, %68 : vector<8x8x128xf32>
    %71 = arith.addf %63, %70 : vector<8x8x128xf32>
    %72 = vector.extract_strided_slice %71 {offsets = [0, 0, 0], sizes = [1, 1, 128], strides = [1, 1, 1]} : vector<8x8x128xf32> to vector<1x1x128xf32>
    %73 = vector.shape_cast %72 : vector<1x1x128xf32> to vector<1x128xf32>
    %74 = tpu.reciprocal %73 {approx = true} : vector<1x128xf32> -> vector<1x128xf32>
    %75 = arith.mulf %73, %74 : vector<1x128xf32>
    %cst_20 = arith.constant 2.000000e+00 : f32
    %76 = vector.broadcast %cst_20 : f32 to vector<1x128xf32>
    %77 = arith.subf %76, %75 : vector<1x128xf32>
    %78 = arith.mulf %74, %77 : vector<1x128xf32>
    %79 = arith.mulf %73, %78 : vector<1x128xf32>
    %cst_21 = arith.constant 2.000000e+00 : f32
    %80 = vector.broadcast %cst_21 : f32 to vector<1x128xf32>
    %81 = arith.subf %80, %79 : vector<1x128xf32>
    %82 = arith.mulf %78, %81 : vector<1x128xf32>
    %83 = vector.extract_strided_slice %71 {offsets = [0, 0, 0], sizes = [1, 8, 128], strides = [1, 1, 1]} : vector<8x8x128xf32> to vector<1x8x128xf32>
    %84 = vector.shape_cast %83 : vector<1x8x128xf32> to vector<8x128xf32>
    %85 = vector.extract_strided_slice %68 {offsets = [0, 0, 0], sizes = [1, 8, 128], strides = [1, 1, 1]} : vector<8x8x128xf32> to vector<1x8x128xf32>
    %86 = vector.shape_cast %85 : vector<1x8x128xf32> to vector<8x128xf32>
    %87 = arith.subf %84, %86 : vector<8x128xf32>
    %88 = vector.extract_strided_slice %71 {offsets = [0, 0, 0], sizes = [8, 1, 128], strides = [1, 1, 1]} : vector<8x8x128xf32> to vector<8x1x128xf32>
    %89 = vector.shape_cast %82 : vector<1x128xf32> to vector<1x1x128xf32>
    %90 = vector.broadcast %89 : vector<1x1x128xf32> to vector<8x1x128xf32>
    %91 = arith.mulf %88, %90 : vector<8x1x128xf32>
    %92 = vector.extract_strided_slice %3 {offsets = [0, 0], sizes = [1, 128], strides = [1, 1]} : vector<8x128xf32> to vector<1x128xf32>
    %93 = arith.mulf %92, %82 : vector<1x128xf32>
    %94 = vector.shape_cast %87 : vector<8x128xf32> to vector<1x8x128xf32>
    %95 = vector.broadcast %91 : vector<8x1x128xf32> to vector<8x8x128xf32>
    %96 = vector.broadcast %94 : vector<1x8x128xf32> to vector<8x8x128xf32>
    %97 = arith.mulf %95, %96 : vector<8x8x128xf32>
    %98 = arith.subf %71, %97 : vector<8x8x128xf32>
    %99 = vector.broadcast %93 : vector<1x128xf32> to vector<8x128xf32>
    %100 = arith.mulf %99, %87 : vector<8x128xf32>
    %101 = arith.subf %3, %100 : vector<8x128xf32>
    %102 = vector.extract_strided_slice %98 {offsets = [1, 1, 0], sizes = [1, 1, 128], strides = [1, 1, 1]} : vector<8x8x128xf32> to vector<1x1x128xf32>
    %103 = vector.shape_cast %102 : vector<1x1x128xf32> to vector<1x128xf32>
    %104 = tpu.reciprocal %103 {approx = true} : vector<1x128xf32> -> vector<1x128xf32>
    %105 = arith.mulf %103, %104 : vector<1x128xf32>
    %cst_22 = arith.constant 2.000000e+00 : f32
    %106 = vector.broadcast %cst_22 : f32 to vector<1x128xf32>
    %107 = arith.subf %106, %105 : vector<1x128xf32>
    %108 = arith.mulf %104, %107 : vector<1x128xf32>
    %109 = arith.mulf %103, %108 : vector<1x128xf32>
    %cst_23 = arith.constant 2.000000e+00 : f32
    %110 = vector.broadcast %cst_23 : f32 to vector<1x128xf32>
    %111 = arith.subf %110, %109 : vector<1x128xf32>
    %112 = arith.mulf %108, %111 : vector<1x128xf32>
    %113 = vector.extract_strided_slice %98 {offsets = [1, 0, 0], sizes = [1, 8, 128], strides = [1, 1, 1]} : vector<8x8x128xf32> to vector<1x8x128xf32>
    %114 = vector.shape_cast %113 : vector<1x8x128xf32> to vector<8x128xf32>
    %115 = vector.extract_strided_slice %68 {offsets = [1, 0, 0], sizes = [1, 8, 128], strides = [1, 1, 1]} : vector<8x8x128xf32> to vector<1x8x128xf32>
    %116 = vector.shape_cast %115 : vector<1x8x128xf32> to vector<8x128xf32>
    %117 = arith.subf %114, %116 : vector<8x128xf32>
    %118 = vector.extract_strided_slice %98 {offsets = [0, 1, 0], sizes = [8, 1, 128], strides = [1, 1, 1]} : vector<8x8x128xf32> to vector<8x1x128xf32>
    %119 = vector.shape_cast %112 : vector<1x128xf32> to vector<1x1x128xf32>
    %120 = vector.broadcast %119 : vector<1x1x128xf32> to vector<8x1x128xf32>
    %121 = arith.mulf %118, %120 : vector<8x1x128xf32>
    %122 = vector.extract_strided_slice %101 {offsets = [1, 0], sizes = [1, 128], strides = [1, 1]} : vector<8x128xf32> to vector<1x128xf32>
    %123 = arith.mulf %122, %112 : vector<1x128xf32>
    %124 = vector.shape_cast %117 : vector<8x128xf32> to vector<1x8x128xf32>
    %125 = vector.broadcast %121 : vector<8x1x128xf32> to vector<8x8x128xf32>
    %126 = vector.broadcast %124 : vector<1x8x128xf32> to vector<8x8x128xf32>
    %127 = arith.mulf %125, %126 : vector<8x8x128xf32>
    %128 = arith.subf %98, %127 : vector<8x8x128xf32>
    %129 = vector.broadcast %123 : vector<1x128xf32> to vector<8x128xf32>
    %130 = arith.mulf %129, %117 : vector<8x128xf32>
    %131 = arith.subf %101, %130 : vector<8x128xf32>
    %132 = vector.extract_strided_slice %128 {offsets = [2, 2, 0], sizes = [1, 1, 128], strides = [1, 1, 1]} : vector<8x8x128xf32> to vector<1x1x128xf32>
    %133 = vector.shape_cast %132 : vector<1x1x128xf32> to vector<1x128xf32>
    %134 = tpu.reciprocal %133 {approx = true} : vector<1x128xf32> -> vector<1x128xf32>
    %135 = arith.mulf %133, %134 : vector<1x128xf32>
    %cst_24 = arith.constant 2.000000e+00 : f32
    %136 = vector.broadcast %cst_24 : f32 to vector<1x128xf32>
    %137 = arith.subf %136, %135 : vector<1x128xf32>
    %138 = arith.mulf %134, %137 : vector<1x128xf32>
    %139 = arith.mulf %133, %138 : vector<1x128xf32>
    %cst_25 = arith.constant 2.000000e+00 : f32
    %140 = vector.broadcast %cst_25 : f32 to vector<1x128xf32>
    %141 = arith.subf %140, %139 : vector<1x128xf32>
    %142 = arith.mulf %138, %141 : vector<1x128xf32>
    %143 = vector.extract_strided_slice %128 {offsets = [2, 0, 0], sizes = [1, 8, 128], strides = [1, 1, 1]} : vector<8x8x128xf32> to vector<1x8x128xf32>
    %144 = vector.shape_cast %143 : vector<1x8x128xf32> to vector<8x128xf32>
    %145 = vector.extract_strided_slice %68 {offsets = [2, 0, 0], sizes = [1, 8, 128], strides = [1, 1, 1]} : vector<8x8x128xf32> to vector<1x8x128xf32>
    %146 = vector.shape_cast %145 : vector<1x8x128xf32> to vector<8x128xf32>
    %147 = arith.subf %144, %146 : vector<8x128xf32>
    %148 = vector.extract_strided_slice %128 {offsets = [0, 2, 0], sizes = [8, 1, 128], strides = [1, 1, 1]} : vector<8x8x128xf32> to vector<8x1x128xf32>
    %149 = vector.shape_cast %142 : vector<1x128xf32> to vector<1x1x128xf32>
    %150 = vector.broadcast %149 : vector<1x1x128xf32> to vector<8x1x128xf32>
    %151 = arith.mulf %148, %150 : vector<8x1x128xf32>
    %152 = vector.extract_strided_slice %131 {offsets = [2, 0], sizes = [1, 128], strides = [1, 1]} : vector<8x128xf32> to vector<1x128xf32>
    %153 = arith.mulf %152, %142 : vector<1x128xf32>
    %154 = vector.shape_cast %147 : vector<8x128xf32> to vector<1x8x128xf32>
    %155 = vector.broadcast %151 : vector<8x1x128xf32> to vector<8x8x128xf32>
    %156 = vector.broadcast %154 : vector<1x8x128xf32> to vector<8x8x128xf32>
    %157 = arith.mulf %155, %156 : vector<8x8x128xf32>
    %158 = arith.subf %128, %157 : vector<8x8x128xf32>
    %159 = vector.broadcast %153 : vector<1x128xf32> to vector<8x128xf32>
    %160 = arith.mulf %159, %147 : vector<8x128xf32>
    %161 = arith.subf %131, %160 : vector<8x128xf32>
    %162 = vector.extract_strided_slice %158 {offsets = [3, 3, 0], sizes = [1, 1, 128], strides = [1, 1, 1]} : vector<8x8x128xf32> to vector<1x1x128xf32>
    %163 = vector.shape_cast %162 : vector<1x1x128xf32> to vector<1x128xf32>
    %164 = tpu.reciprocal %163 {approx = true} : vector<1x128xf32> -> vector<1x128xf32>
    %165 = arith.mulf %163, %164 : vector<1x128xf32>
    %cst_26 = arith.constant 2.000000e+00 : f32
    %166 = vector.broadcast %cst_26 : f32 to vector<1x128xf32>
    %167 = arith.subf %166, %165 : vector<1x128xf32>
    %168 = arith.mulf %164, %167 : vector<1x128xf32>
    %169 = arith.mulf %163, %168 : vector<1x128xf32>
    %cst_27 = arith.constant 2.000000e+00 : f32
    %170 = vector.broadcast %cst_27 : f32 to vector<1x128xf32>
    %171 = arith.subf %170, %169 : vector<1x128xf32>
    %172 = arith.mulf %168, %171 : vector<1x128xf32>
    %173 = vector.extract_strided_slice %158 {offsets = [3, 0, 0], sizes = [1, 8, 128], strides = [1, 1, 1]} : vector<8x8x128xf32> to vector<1x8x128xf32>
    %174 = vector.shape_cast %173 : vector<1x8x128xf32> to vector<8x128xf32>
    %175 = vector.extract_strided_slice %68 {offsets = [3, 0, 0], sizes = [1, 8, 128], strides = [1, 1, 1]} : vector<8x8x128xf32> to vector<1x8x128xf32>
    %176 = vector.shape_cast %175 : vector<1x8x128xf32> to vector<8x128xf32>
    %177 = arith.subf %174, %176 : vector<8x128xf32>
    %178 = vector.extract_strided_slice %158 {offsets = [0, 3, 0], sizes = [8, 1, 128], strides = [1, 1, 1]} : vector<8x8x128xf32> to vector<8x1x128xf32>
    %179 = vector.shape_cast %172 : vector<1x128xf32> to vector<1x1x128xf32>
    %180 = vector.broadcast %179 : vector<1x1x128xf32> to vector<8x1x128xf32>
    %181 = arith.mulf %178, %180 : vector<8x1x128xf32>
    %182 = vector.extract_strided_slice %161 {offsets = [3, 0], sizes = [1, 128], strides = [1, 1]} : vector<8x128xf32> to vector<1x128xf32>
    %183 = arith.mulf %182, %172 : vector<1x128xf32>
    %184 = vector.shape_cast %177 : vector<8x128xf32> to vector<1x8x128xf32>
    %185 = vector.broadcast %181 : vector<8x1x128xf32> to vector<8x8x128xf32>
    %186 = vector.broadcast %184 : vector<1x8x128xf32> to vector<8x8x128xf32>
    %187 = arith.mulf %185, %186 : vector<8x8x128xf32>
    %188 = arith.subf %158, %187 : vector<8x8x128xf32>
    %189 = vector.broadcast %183 : vector<1x128xf32> to vector<8x128xf32>
    %190 = arith.mulf %189, %177 : vector<8x128xf32>
    %191 = arith.subf %161, %190 : vector<8x128xf32>
    %192 = vector.extract_strided_slice %188 {offsets = [4, 4, 0], sizes = [1, 1, 128], strides = [1, 1, 1]} : vector<8x8x128xf32> to vector<1x1x128xf32>
    %193 = vector.shape_cast %192 : vector<1x1x128xf32> to vector<1x128xf32>
    %194 = tpu.reciprocal %193 {approx = true} : vector<1x128xf32> -> vector<1x128xf32>
    %195 = arith.mulf %193, %194 : vector<1x128xf32>
    %cst_28 = arith.constant 2.000000e+00 : f32
    %196 = vector.broadcast %cst_28 : f32 to vector<1x128xf32>
    %197 = arith.subf %196, %195 : vector<1x128xf32>
    %198 = arith.mulf %194, %197 : vector<1x128xf32>
    %199 = arith.mulf %193, %198 : vector<1x128xf32>
    %cst_29 = arith.constant 2.000000e+00 : f32
    %200 = vector.broadcast %cst_29 : f32 to vector<1x128xf32>
    %201 = arith.subf %200, %199 : vector<1x128xf32>
    %202 = arith.mulf %198, %201 : vector<1x128xf32>
    %203 = vector.extract_strided_slice %188 {offsets = [4, 0, 0], sizes = [1, 8, 128], strides = [1, 1, 1]} : vector<8x8x128xf32> to vector<1x8x128xf32>
    %204 = vector.shape_cast %203 : vector<1x8x128xf32> to vector<8x128xf32>
    %205 = vector.extract_strided_slice %68 {offsets = [4, 0, 0], sizes = [1, 8, 128], strides = [1, 1, 1]} : vector<8x8x128xf32> to vector<1x8x128xf32>
    %206 = vector.shape_cast %205 : vector<1x8x128xf32> to vector<8x128xf32>
    %207 = arith.subf %204, %206 : vector<8x128xf32>
    %208 = vector.extract_strided_slice %188 {offsets = [0, 4, 0], sizes = [8, 1, 128], strides = [1, 1, 1]} : vector<8x8x128xf32> to vector<8x1x128xf32>
    %209 = vector.shape_cast %202 : vector<1x128xf32> to vector<1x1x128xf32>
    %210 = vector.broadcast %209 : vector<1x1x128xf32> to vector<8x1x128xf32>
    %211 = arith.mulf %208, %210 : vector<8x1x128xf32>
    %212 = vector.extract_strided_slice %191 {offsets = [4, 0], sizes = [1, 128], strides = [1, 1]} : vector<8x128xf32> to vector<1x128xf32>
    %213 = arith.mulf %212, %202 : vector<1x128xf32>
    %214 = vector.shape_cast %207 : vector<8x128xf32> to vector<1x8x128xf32>
    %215 = vector.broadcast %211 : vector<8x1x128xf32> to vector<8x8x128xf32>
    %216 = vector.broadcast %214 : vector<1x8x128xf32> to vector<8x8x128xf32>
    %217 = arith.mulf %215, %216 : vector<8x8x128xf32>
    %218 = arith.subf %188, %217 : vector<8x8x128xf32>
    %219 = vector.broadcast %213 : vector<1x128xf32> to vector<8x128xf32>
    %220 = arith.mulf %219, %207 : vector<8x128xf32>
    %221 = arith.subf %191, %220 : vector<8x128xf32>
    %222 = vector.extract_strided_slice %218 {offsets = [5, 5, 0], sizes = [1, 1, 128], strides = [1, 1, 1]} : vector<8x8x128xf32> to vector<1x1x128xf32>
    %223 = vector.shape_cast %222 : vector<1x1x128xf32> to vector<1x128xf32>
    %224 = tpu.reciprocal %223 {approx = true} : vector<1x128xf32> -> vector<1x128xf32>
    %225 = arith.mulf %223, %224 : vector<1x128xf32>
    %cst_30 = arith.constant 2.000000e+00 : f32
    %226 = vector.broadcast %cst_30 : f32 to vector<1x128xf32>
    %227 = arith.subf %226, %225 : vector<1x128xf32>
    %228 = arith.mulf %224, %227 : vector<1x128xf32>
    %229 = arith.mulf %223, %228 : vector<1x128xf32>
    %cst_31 = arith.constant 2.000000e+00 : f32
    %230 = vector.broadcast %cst_31 : f32 to vector<1x128xf32>
    %231 = arith.subf %230, %229 : vector<1x128xf32>
    %232 = arith.mulf %228, %231 : vector<1x128xf32>
    %233 = vector.extract_strided_slice %218 {offsets = [5, 0, 0], sizes = [1, 8, 128], strides = [1, 1, 1]} : vector<8x8x128xf32> to vector<1x8x128xf32>
    %234 = vector.shape_cast %233 : vector<1x8x128xf32> to vector<8x128xf32>
    %235 = vector.extract_strided_slice %68 {offsets = [5, 0, 0], sizes = [1, 8, 128], strides = [1, 1, 1]} : vector<8x8x128xf32> to vector<1x8x128xf32>
    %236 = vector.shape_cast %235 : vector<1x8x128xf32> to vector<8x128xf32>
    %237 = arith.subf %234, %236 : vector<8x128xf32>
    %238 = vector.extract_strided_slice %218 {offsets = [0, 5, 0], sizes = [8, 1, 128], strides = [1, 1, 1]} : vector<8x8x128xf32> to vector<8x1x128xf32>
    %239 = vector.shape_cast %232 : vector<1x128xf32> to vector<1x1x128xf32>
    %240 = vector.broadcast %239 : vector<1x1x128xf32> to vector<8x1x128xf32>
    %241 = arith.mulf %238, %240 : vector<8x1x128xf32>
    %242 = vector.extract_strided_slice %221 {offsets = [5, 0], sizes = [1, 128], strides = [1, 1]} : vector<8x128xf32> to vector<1x128xf32>
    %243 = arith.mulf %242, %232 : vector<1x128xf32>
    %244 = vector.shape_cast %237 : vector<8x128xf32> to vector<1x8x128xf32>
    %245 = vector.broadcast %241 : vector<8x1x128xf32> to vector<8x8x128xf32>
    %246 = vector.broadcast %244 : vector<1x8x128xf32> to vector<8x8x128xf32>
    %247 = arith.mulf %245, %246 : vector<8x8x128xf32>
    %248 = arith.subf %218, %247 : vector<8x8x128xf32>
    %249 = vector.broadcast %243 : vector<1x128xf32> to vector<8x128xf32>
    %250 = arith.mulf %249, %237 : vector<8x128xf32>
    %251 = arith.subf %221, %250 : vector<8x128xf32>
    %252 = vector.extract_strided_slice %248 {offsets = [6, 6, 0], sizes = [1, 1, 128], strides = [1, 1, 1]} : vector<8x8x128xf32> to vector<1x1x128xf32>
    %253 = vector.shape_cast %252 : vector<1x1x128xf32> to vector<1x128xf32>
    %254 = tpu.reciprocal %253 {approx = true} : vector<1x128xf32> -> vector<1x128xf32>
    %255 = arith.mulf %253, %254 : vector<1x128xf32>
    %cst_32 = arith.constant 2.000000e+00 : f32
    %256 = vector.broadcast %cst_32 : f32 to vector<1x128xf32>
    %257 = arith.subf %256, %255 : vector<1x128xf32>
    %258 = arith.mulf %254, %257 : vector<1x128xf32>
    %259 = arith.mulf %253, %258 : vector<1x128xf32>
    %cst_33 = arith.constant 2.000000e+00 : f32
    %260 = vector.broadcast %cst_33 : f32 to vector<1x128xf32>
    %261 = arith.subf %260, %259 : vector<1x128xf32>
    %262 = arith.mulf %258, %261 : vector<1x128xf32>
    %263 = vector.extract_strided_slice %248 {offsets = [6, 0, 0], sizes = [1, 8, 128], strides = [1, 1, 1]} : vector<8x8x128xf32> to vector<1x8x128xf32>
    %264 = vector.shape_cast %263 : vector<1x8x128xf32> to vector<8x128xf32>
    %265 = vector.extract_strided_slice %68 {offsets = [6, 0, 0], sizes = [1, 8, 128], strides = [1, 1, 1]} : vector<8x8x128xf32> to vector<1x8x128xf32>
    %266 = vector.shape_cast %265 : vector<1x8x128xf32> to vector<8x128xf32>
    %267 = arith.subf %264, %266 : vector<8x128xf32>
    %268 = vector.extract_strided_slice %248 {offsets = [0, 6, 0], sizes = [8, 1, 128], strides = [1, 1, 1]} : vector<8x8x128xf32> to vector<8x1x128xf32>
    %269 = vector.shape_cast %262 : vector<1x128xf32> to vector<1x1x128xf32>
    %270 = vector.broadcast %269 : vector<1x1x128xf32> to vector<8x1x128xf32>
    %271 = arith.mulf %268, %270 : vector<8x1x128xf32>
    %272 = vector.extract_strided_slice %251 {offsets = [6, 0], sizes = [1, 128], strides = [1, 1]} : vector<8x128xf32> to vector<1x128xf32>
    %273 = arith.mulf %272, %262 : vector<1x128xf32>
    %274 = vector.shape_cast %267 : vector<8x128xf32> to vector<1x8x128xf32>
    %275 = vector.broadcast %271 : vector<8x1x128xf32> to vector<8x8x128xf32>
    %276 = vector.broadcast %274 : vector<1x8x128xf32> to vector<8x8x128xf32>
    %277 = arith.mulf %275, %276 : vector<8x8x128xf32>
    %278 = arith.subf %248, %277 : vector<8x8x128xf32>
    %279 = vector.broadcast %273 : vector<1x128xf32> to vector<8x128xf32>
    %280 = arith.mulf %279, %267 : vector<8x128xf32>
    %281 = arith.subf %251, %280 : vector<8x128xf32>
    %282 = vector.extract_strided_slice %278 {offsets = [7, 7, 0], sizes = [1, 1, 128], strides = [1, 1, 1]} : vector<8x8x128xf32> to vector<1x1x128xf32>
    %283 = vector.shape_cast %282 : vector<1x1x128xf32> to vector<1x128xf32>
    %284 = tpu.reciprocal %283 {approx = true} : vector<1x128xf32> -> vector<1x128xf32>
    %285 = arith.mulf %283, %284 : vector<1x128xf32>
    %cst_34 = arith.constant 2.000000e+00 : f32
    %286 = vector.broadcast %cst_34 : f32 to vector<1x128xf32>
    %287 = arith.subf %286, %285 : vector<1x128xf32>
    %288 = arith.mulf %284, %287 : vector<1x128xf32>
    %289 = arith.mulf %283, %288 : vector<1x128xf32>
    %cst_35 = arith.constant 2.000000e+00 : f32
    %290 = vector.broadcast %cst_35 : f32 to vector<1x128xf32>
    %291 = arith.subf %290, %289 : vector<1x128xf32>
    %292 = arith.mulf %288, %291 : vector<1x128xf32>
    %293 = vector.extract_strided_slice %278 {offsets = [7, 0, 0], sizes = [1, 8, 128], strides = [1, 1, 1]} : vector<8x8x128xf32> to vector<1x8x128xf32>
    %294 = vector.shape_cast %293 : vector<1x8x128xf32> to vector<8x128xf32>
    %295 = vector.extract_strided_slice %68 {offsets = [7, 0, 0], sizes = [1, 8, 128], strides = [1, 1, 1]} : vector<8x8x128xf32> to vector<1x8x128xf32>
    %296 = vector.shape_cast %295 : vector<1x8x128xf32> to vector<8x128xf32>
    %297 = arith.subf %294, %296 : vector<8x128xf32>
    %298 = vector.extract_strided_slice %281 {offsets = [7, 0], sizes = [1, 128], strides = [1, 1]} : vector<8x128xf32> to vector<1x128xf32>
    %299 = arith.mulf %298, %292 : vector<1x128xf32>
    %300 = vector.broadcast %299 : vector<1x128xf32> to vector<8x128xf32>
    %301 = arith.mulf %300, %297 : vector<8x128xf32>
    %302 = arith.subf %281, %301 : vector<8x128xf32>
    %cst_36 = arith.constant 1.000000e+01 : f32
    %303 = vector.broadcast %cst_36 : f32 to vector<8x128xf32>
    %304 = arith.mulf %302, %303 : vector<8x128xf32>
    %cst_37 = arith.constant dense<0xFF800000> : vector<128xf32>
    %305 = vector.multi_reduction <maximumf>, %304, %cst_37 [0] : vector<8x128xf32> to vector<128xf32>
    %306 = vector.shape_cast %305 : vector<128xf32> to vector<1x128xf32>
    %307 = vector.broadcast %306 : vector<1x128xf32> to vector<8x128xf32>
    %308 = arith.subf %304, %307 : vector<8x128xf32>
    %309 = math.exp %308 : vector<8x128xf32>
    %cst_38 = arith.constant dense<0.000000e+00> : vector<128xf32>
    %310 = vector.multi_reduction <add>, %309, %cst_38 [0] : vector<8x128xf32> to vector<128xf32>
    %311 = vector.shape_cast %310 : vector<128xf32> to vector<1x128xf32>
    %312 = tpu.reciprocal %311 {approx = true} : vector<1x128xf32> -> vector<1x128xf32>
    %313 = arith.mulf %311, %312 : vector<1x128xf32>
    %cst_39 = arith.constant 2.000000e+00 : f32
    %314 = vector.broadcast %cst_39 : f32 to vector<1x128xf32>
    %315 = arith.subf %314, %313 : vector<1x128xf32>
    %316 = arith.mulf %312, %315 : vector<1x128xf32>
    %317 = vector.broadcast %316 : vector<1x128xf32> to vector<8x128xf32>
    %318 = arith.mulf %309, %317 : vector<8x128xf32>
    %c0_40 = arith.constant 0 : index
    %c0_41 = arith.constant 0 : index
    %319 = vector.load %arg2[%c0_40, %c0_41] : memref<8x128xf32, #tpu.memory_space<vmem>>, vector<8x128xf32>
    tpu.vector_store %arg2[%c0_40, %c0_41], %318 {strides = array<i32>} : memref<8x128xf32, #tpu.memory_space<vmem>>, vector<8x128xf32>,
    return
  }
  func.func @transform_0(%arg0: i32) -> (i32, i32, i32) {
    %c0_i32 = arith.constant 0 : i32
    %c0_i32_0 = arith.constant 0 : i32
    %c0_i32_1 = arith.constant 0 : i32
    return %c0_i32, %c0_i32_0, %arg0 : i32, i32, i32
  }
  func.func @transform_1(%arg0: i32) -> (i32, i32) {
    %c0_i32 = arith.constant 0 : i32
    %c0_i32_0 = arith.constant 0 : i32
    return %c0_i32, %arg0 : i32, i32
  }
}

</mosaic_0001>

<bundles_post_ra>
// kernel: tpu_custom_call.1
= control target key start
LH: loop header
LB: loop body
LE: loop exit
PB: predicated region body
PF: predicated region fallthrough
CT: control target
= control target key end

     0   :  { %6 = vsyncpa [#allocation3], 0  ;;  %s2062_s0 = inlined_call_operand.hbm [shape: f32[16,8,128], index: 0, kind: input, shape index: {}]   ;;  %s2063_s1 = inlined_call_operand.hbm [shape: f32[8,128], index: 1, kind: output, shape index: {}]  }
   0x1   :  { %7 = vsyncpa [#allocation4], 0  ;;  %s1315_s6 = smov [#allocation2]   ;;  %s1267_s10 = scalar_lea.hbm %s2062_s0, 2048 }
   0x2   :  { %s13_s7 = sshll.u32 %s1315_s6, 4  ;;  %p1268_p0 = scmp.ne.s32.totalorder %s2062_s0, %s1267_s10  ;;  %s14_s7 = int_to_ptr.vmem [resolvable:$true] %s13_s7 }
   0x3   :  { %p1271_p1 = scmp.lt.u32.totalorder %s1267_s10, %s2062_s0 }
   0x5   :  { %p1273_p2 = pnand %p1271_p1, %p1268_p0 }
   0x7   :  { %1276 = shalt.err (!%p1273_p2)
}
   0x8   :  { %s1277_s15 = scalar_lea.vmem %s14_s7, 2048  ;;  %p1282_p4 = scmp.lt.s32.totalorder %s14_s7, %s14_s7 }
   0x9   :  { %p1278_p3 = scmp.ne.s32.totalorder %s14_s7, %s1277_s15  ;;  %p1283_p5 = scmp.lt.s32.totalorder %s1277_s15, %s1277_s15 }
   0xb   :  { %p1284_p6 = por %p1283_p5, %p1282_p4 }
   0xd   :  { %p1285_p7 = pnand %p1284_p6, %p1278_p3 }
   0xf   :  { %1288 = shalt.err (!%p1285_p7)
}
  0x10   :  { %s1316_s16 = smov 128   ;;  %s1317_s17 = smov 8  }
  0x11   :  { %19 = dma.hbm_to_vmem [thread:$0]  %s2062_s0, 2048, %s14_s7, [#allocation3], %s1316_s16, %s1316_s16, %s1317_s17  }
  0x12   :  { %1311 = dma.done.wait [#allocation3], 2048  }
  0x13   :  { %1312 = vsyncadd [#allocation3], 4294965248  ;;  %v23_v0 = vld [vmem:[#allocation2] sm:$0xff]  ;;  %v24_v1 = vld [vmem:[#allocation2 + $0x8] sm:$0xff]  ;;  %v71_v11 = vlaneseq  ;;  %v2064_v20 = vmov 0.0   ;;  %s1319_s0 = smov [#allocation5]  }
  0x14   :  { %v25_v2 = vld [vmem:[#allocation2 + $0x10] sm:$0xff]  ;;  %v39_v3 = vadd.f32 %v24_v1, %v23_v0  ;;  %v26_v4 = vld [vmem:[#allocation2 + $0x18] sm:$0xff]  ;;  %v27_v6 = vld [vmem:[#allocation2 + $0x20] sm:$0xff]  ;;  %s1225_s20 = sshll.u32 %s1319_s0, 4  ;;  %s1226_s20 = int_to_ptr.vmem [resolvable:$true] %s1225_s20 }
  0x15   :  { %v28_v8 = vld [vmem:[#allocation2 + $0x28] sm:$0xff]  ;;  %v29_v10 = vld [vmem:[#allocation2 + $0x30] sm:$0xff]  ;;  %v30_v13 = vld [vmem:[#allocation2 + $0x38] sm:$0xff]  ;;  %v1344_v16 = vshrl.u32 %v71_v11, 7  ;;  %s1289_s21 = scalar_lea.vmem %s1226_s20, 128  ;;  %p1294_p9 = scmp.lt.s32.totalorder %s1226_s20, %s1226_s20 }
  0x16   :  { %v40_v5 = vadd.f32 %v39_v3, %v25_v2  ;;  %v1342_v15 = vld [vmem:[#allocation2 + $0x40] sm:$0xff]  ;;  %v1346_v18 = vld [vmem:[#allocation2 + $0x48] sm:$0xff]  ;;  %v1353_v22 = vld [vmem:[#allocation2 + $0x50] sm:$0xff]  ;;  %p1290_p8 = scmp.ne.s32.totalorder %s1226_s20, %s1289_s21  ;;  %p1295_p10 = scmp.lt.s32.totalorder %s1289_s21, %s1289_s21 }
  0x17   :  { %vm844_vm0 = vcmp.eq.s32.totalorder %v1344_v16, 3  ;;  %v1356_v24 = vld [vmem:[#allocation2 + $0x58] sm:$0xff]  ;;  %v1359_v26 = vld [vmem:[#allocation2 + $0x60] sm:$0xff]  ;;  %v1362_v28 = vld [vmem:[#allocation2 + $0x68] sm:$0xff]  ;;  %vm845_vm1 = vcmp.eq.s32.totalorder %v1344_v16, 4  ;;  %vm846_vm2 = vcmp.eq.s32.totalorder %v1344_v16, 5 }
  0x18   :  { %v41_v7 = vadd.f32 %v40_v5, %v26_v4  ;;  %v1351_v21 = vsel %vm844_vm0, 1.0, %v2064_v20  ;;  %v1365_v30 = vld [vmem:[#allocation2 + $0x70] sm:$0xff]  ;;  %v1368_v32 = vld [vmem:[#allocation2 + $0x78] sm:$0xff]  ;;  %vm847_vm3 = vcmp.eq.s32.totalorder %v1344_v16, 6  ;;  %vm848_vm4 = vcmp.eq.s32.totalorder %v1344_v16, 7  ;;  %p1296_p11 = por %p1295_p10, %p1294_p9 }
  0x19   :  { %2080 = vst [vmem:[#allocation8_spill] sm:$0xff] %v1351_v21  ;;  %v1377_v35 = vsel %vm845_vm1, 1.0, %v2064_v20  ;;  %v1380_v36 = vsel %vm846_vm2, 1.0, %v2064_v20  ;;  %v1383_v37 = vsel %vm847_vm3, 1.0, %v2064_v20  ;;  %v1386_v38 = vsel %vm848_vm4, 1.0, %v2064_v20 }
  0x1a   :  { %v42_v9 = vadd.f32 %v41_v7, %v27_v6  ;;  %2081 = vst [vmem:[#allocation9_spill] sm:$0xff] %v1377_v35  ;;  %2082 = vst [vmem:[#allocation10_spill] sm:$0xff] %v1380_v36  ;;  %v1397_v42 = vsub.s32 0, %v1344_v16  ;;  %v1419_v52 = vsub.s32 1, %v1344_v16  ;;  %vm841_vm5 = vcmp.eq.s32.totalorder %v1344_v16, 0  ;;  %p1297_p12 = pnand %p1296_p11, %p1290_p8 }
  0x1b   :  { %2083 = vst [vmem:[#allocation11_spill] sm:$0xff] %v1383_v37  ;;  %2084 = vst [vmem:[#allocation12_spill] sm:$0xff] %v1386_v38  ;;  %vm842_vm6 = vcmp.eq.s32.totalorder %v1344_v16, 1  ;;  %vm843_vm7 = vcmp.eq.s32.totalorder %v1344_v16, 2 }
  0x1c   :  { %v43_v12 = vadd.f32 %v42_v9, %v28_v8  ;;  %2086 = vst [vmem:[#allocation14_spill] sm:$0xff] %v1397_v42  ;;  %2087 = vst [vmem:[#allocation15_spill] sm:$0xff] %v1419_v52 }
  0x1e   :  { %v44_v14 = vadd.f32 %v43_v12, %v29_v10 }
  0x20   :  { %v45_v17 = vadd.f32 %v44_v14, %v30_v13 }
  0x22   :  { %v46_v19 = vadd.f32 %v45_v17, %v1342_v15 }
  0x24   :  { %v47_v23 = vadd.f32 %v46_v19, %v1346_v18 }
  0x26   :  { %v48_v25 = vadd.f32 %v47_v23, %v1353_v22 }
  0x28   :  { %v49_v27 = vadd.f32 %v48_v25, %v1356_v24 }
  0x2a   :  { %v50_v29 = vadd.f32 %v49_v27, %v1359_v26 }
  0x2c   :  { %v51_v31 = vadd.f32 %v50_v29, %v1362_v28 }
  0x2e   :  { %v52_v33 = vadd.f32 %v51_v31, %v1365_v30  ;;  %v1467_v31 = vsub.s32 2, %v1344_v16 }
  0x30   :  { %v53_v34 = vadd.f32 %v52_v33, %v1368_v32  ;;  %2088 = vst [vmem:[#allocation16_spill] sm:$0xff] %v1467_v31  ;;  %v1470_v33 = vsel %vm841_vm5, 1.0, %v2064_v20 }
  0x31   :  { %2089 = vst [vmem:[#allocation17_spill] sm:$0xff] %v1470_v33 }
  0x32   :  { %v1388_v39 = vmul.f32 0.0625, %v53_v34  ;;  %v1476_v34 = vsub.s32 4, %v1344_v16 }
  0x34   :  { %2085 = vst [vmem:[#allocation13_spill] sm:$0xff] %v1388_v39  ;;  %v1391_v40 = vsub.f32 %v23_v0, %v1388_v39  ;;  %v1394_v41 = vsub.f32 %v24_v1, %v1388_v39  ;;  %v1400_v43 = vsub.f32 %v25_v2, %v1388_v39  ;;  %v1403_v44 = vsub.f32 %v26_v4, %v1388_v39 }
  0x35   :  { %v1412_v48 = vsub.f32 %v27_v6, %v1388_v39  ;;  %v1423_v54 = vsub.f32 %v28_v8, %v1388_v39  ;;  %v1435_v62 = vsub.f32 %v29_v10, %v1388_v39  ;;  %v1446_v6 = vsub.f32 %v30_v13, %v1388_v39 }
  0x36   :  { %v74_v45 = vrot.slane %v1391_v40, %v1397_v42  ;;  %v78_v46 = vrot.slane %v1394_v41, %v1397_v42  ;;  %v82_v47 = vrot.slane %v1400_v43, %v1397_v42  ;;  %v86_v49 = vrot.slane %v1403_v44, %v1397_v42 }
  0x37   :  { %v90_v55 = vrot.slane %v1412_v48, %v1397_v42  ;;  %v170_v58 = vrot.slane %v1391_v40, %v1419_v52  ;;  %v174_v59 = vrot.slane %v1394_v41, %v1419_v52  ;;  %v178_v61 = vrot.slane %v1400_v43, %v1419_v52 }
  0x38   :  { %v135_v50 = vmul.f32 %v74_v45, %v1391_v40  ;;  %v136_v51 = vmul.f32 %v78_v46, %v1394_v41  ;;  %v137_v53 = vmul.f32 %v82_v47, %v1400_v43  ;;  %v138_v56 = vmul.f32 %v86_v49, %v1403_v44 }
  0x39   :  { %v94_v63 = vrot.slane %v1423_v54, %v1397_v42  ;;  %v139_v0 = vmul.f32 %v90_v55, %v1412_v48  ;;  %v182_v2 = vrot.slane %v1403_v44, %v1419_v52  ;;  %v231_v3 = vmul.f32 %v170_v58, %v1391_v40 }
  0x3a   :  { %v151_v57 = vadd.f32 %v136_v51, %v135_v50  ;;  %v232_v4 = vmul.f32 %v174_v59, %v1394_v41  ;;  %v233_v5 = vmul.f32 %v178_v61, %v1400_v43  ;;  %v98_v7 = vrot.slane %v1435_v62, %v1397_v42 }
  0x3b   :  { %v140_v8 = vmul.f32 %v94_v63, %v1423_v54  ;;  %v186_v10 = vrot.slane %v1412_v48, %v1419_v52  ;;  %v234_v11 = vmul.f32 %v182_v2, %v1403_v44  ;;  %v1458_v13 = vsub.f32 %v1342_v15, %v1388_v39 }
  0x3c   :  { %v152_v60 = vadd.f32 %v151_v57, %v137_v53  ;;  %v247_v12 = vadd.f32 %v232_v4, %v231_v3  ;;  %v102_v17 = vrot.slane %v1446_v6, %v1397_v42  ;;  %v141_v19 = vmul.f32 %v98_v7, %v1435_v62 }
  0x3d   :  { %v190_v25 = vrot.slane %v1423_v54, %v1419_v52  ;;  %v235_v27 = vmul.f32 %v186_v10, %v1412_v48  ;;  %v1473_v15 = vsub.s32 3, %v1344_v16  ;;  %v1479_v45 = vsub.s32 5, %v1344_v16 }
  0x3e   :  { %v153_v1 = vadd.f32 %v152_v60, %v138_v56  ;;  %v248_v14 = vadd.f32 %v247_v12, %v233_v5  ;;  %v1482_v46 = vsel %vm842_vm6, 1.0, %v2064_v20  ;;  %v1486_v47 = vsub.f32 %v1346_v18, %v1388_v39 }
  0x3f   :  { %2090 = vst [vmem:[#allocation18_spill] sm:$0xff] %v1482_v46  ;;  %v106_v49 = vrot.slane %v1458_v13, %v1397_v42  ;;  %v142_v50 = vmul.f32 %v102_v17, %v1446_v6  ;;  %v194_v53 = vrot.slane %v1435_v62, %v1419_v52  ;;  %v236_v55 = vmul.f32 %v190_v25, %v1423_v54 }
  0x40   :  { %v154_v9 = vadd.f32 %v153_v1, %v139_v0  ;;  %v249_v29 = vadd.f32 %v248_v14, %v234_v11  ;;  %v1495_v57 = vmul.f32 1e-06, %v1470_v33  ;;  %v1499_v58 = vsub.f32 %v1353_v22, %v1388_v39 }
  0x41   :  { %v1503_v18 = vsub.f32 %v1356_v24, %v1388_v39  ;;  %v1506_v59 = vsub.s32 6, %v1344_v16  ;;  %v1509_v60 = vmul.f32 1e-06, %v1482_v46  ;;  %v266_v61 = vrot.slane %v1391_v40, %v1467_v31 }
  0x42   :  { %v155_v23 = vadd.f32 %v154_v9, %v140_v8  ;;  %v250_v56 = vadd.f32 %v249_v29, %v235_v27  ;;  %v270_v63 = vrot.slane %v1394_v41, %v1467_v31  ;;  %v1516_v0 = vsub.s32 7, %v1344_v16 }
  0x43   :  { %2091 = vst [vmem:[#allocation19_spill] sm:$0xff] %v1509_v60  ;;  %v1519_v22 = vmul.f32 1e-06, %v1377_v35  ;;  %v1523_v24 = vsub.f32 %v1359_v26, %v1388_v39  ;;  %v110_v1 = vrot.slane %v1486_v47, %v1397_v42  ;;  %v143_v2 = vmul.f32 %v106_v49, %v1458_v13 }
  0x44   :  { %v156_v51 = vadd.f32 %v155_v23, %v141_v19  ;;  %v1530_v4 = vsub.f32 %v1362_v28, %v1388_v39  ;;  %v198_v5 = vrot.slane %v1446_v6, %v1419_v52  ;;  %v237_v7 = vmul.f32 %v194_v53, %v1435_v62 }
  0x45   :  { %2092 = vst [vmem:[#allocation20_spill] sm:$0xff] %v1519_v22  ;;  %v251_v8 = vadd.f32 %v250_v56, %v236_v55  ;;  %v1537_v26 = vsub.f32 %v1365_v30, %v1388_v39  ;;  %v1541_v9 = vsub.f32 %v1368_v32, %v1388_v39  ;;  %v114_v10 = vrot.slane %v1499_v58, %v1397_v42 }
  0x46   :  { %v157_v3 = vadd.f32 %v156_v51, %v142_v50  ;;  %v118_v28 = vrot.slane %v1503_v18, %v1397_v42  ;;  %v274_v11 = vrot.slane %v1400_v43, %v1467_v31  ;;  %v327_v12 = vmul.f32 %v266_v61, %v1391_v40 }
  0x47   :  { %v328_v14 = vmul.f32 %v270_v63, %v1394_v41  ;;  %v1552_v30 = vmul.f32 1e-06, %v1380_v36  ;;  %v122_v32 = vrot.slane %v1523_v24, %v1397_v42  ;;  %v144_v17 = vmul.f32 %v110_v1, %v1486_v47 }
  0x48   :  { %v158_v19 = vadd.f32 %v157_v3, %v143_v2  ;;  %v1558_v23 = vmul.f32 1e-06, %v1383_v37  ;;  %v126_v25 = vrot.slane %v1530_v4, %v1397_v42  ;;  %v202_v27 = vrot.slane %v1458_v13, %v1419_v52 }
  0x49   :  { %2093 = vst [vmem:[#allocation21_spill] sm:$0xff] %v1552_v30  ;;  %v238_v29 = vmul.f32 %v198_v5, %v1446_v6  ;;  %v252_v49 = vadd.f32 %v251_v8, %v237_v7  ;;  %v130_v50 = vrot.slane %v1537_v26, %v1397_v42  ;;  %v134_v51 = vrot.slane %v1541_v9, %v1397_v42 }
  0x4a   :  { %2094 = vst [vmem:[#allocation22_spill] sm:$0xff] %v1558_v23  ;;  %v145_v53 = vmul.f32 %v114_v10, %v1499_v58  ;;  %v146_v55 = vmul.f32 %v118_v28, %v1503_v18  ;;  %v206_v56 = vrot.slane %v1486_v47, %v1419_v52  ;;  %v278_v61 = vrot.slane %v1403_v44, %v1467_v31 }
  0x4b   :  { %v329_v63 = vmul.f32 %v274_v11, %v1400_v43  ;;  %v343_v1 = vadd.f32 %v328_v14, %v327_v12  ;;  %v159_v2 = vadd.f32 %v158_v19, %v144_v17  ;;  %v210_v3 = vrot.slane %v1499_v58, %v1419_v52 }
  0x4c   :  { %v214_v5 = vrot.slane %v1503_v18, %v1419_v52  ;;  %v218_v7 = vrot.slane %v1523_v24, %v1419_v52  ;;  %v222_v8 = vrot.slane %v1530_v4, %v1419_v52  ;;  %v226_v10 = vrot.slane %v1537_v26, %v1419_v52 }
  0x4d   :  { %v239_v28 = vmul.f32 %v202_v27, %v1458_v13  ;;  %v253_v11 = vadd.f32 %v252_v49, %v238_v29  ;;  %v147_v12 = vmul.f32 %v122_v32, %v1523_v24  ;;  %v148_v14 = vmul.f32 %v126_v25, %v1530_v4 }
  0x4e   :  { %v1590_v17 = vmul.f32 %v130_v50, %v1537_v26  ;;  %v230_v19 = vrot.slane %v1541_v9, %v1419_v52  ;;  %v1595_v20 = vmul.f32 %v134_v51, %v1541_v9  ;;  %v282_v37 = vrot.slane %v1412_v48, %v1467_v31 }
  0x4f   :  { %v330_v36 = vmul.f32 %v278_v61, %v1403_v44  ;;  %v344_v27 = vadd.f32 %v343_v1, %v329_v63  ;;  %v160_v29 = vadd.f32 %v159_v2, %v145_v53  ;;  %v240_v32 = vmul.f32 %v206_v56, %v1486_v47 }
  0x50   :  { %v241_v25 = vmul.f32 %v210_v3, %v1499_v58  ;;  %v242_v49 = vmul.f32 %v214_v5, %v1503_v18  ;;  %v1604_v50 = vmul.f32 %v218_v7, %v1523_v24  ;;  %v1607_v35 = vmul.f32 %v222_v8, %v1530_v4 }
  0x51   :  { %v1610_v51 = vmul.f32 %v226_v10, %v1537_v26  ;;  %v254_v52 = vadd.f32 %v253_v11, %v239_v28  ;;  %v1613_v61 = vmul.f32 %v230_v19, %v1541_v9  ;;  %v286_v53 = vrot.slane %v1423_v54, %v1467_v31 }
  0x52   :  { %v290_v56 = vrot.slane %v1435_v62, %v1467_v31  ;;  %v294_v63 = vrot.slane %v1446_v6, %v1467_v31  ;;  %v298_v1 = vrot.slane %v1458_v13, %v1467_v31  ;;  %v302_v2 = vrot.slane %v1486_v47, %v1467_v31 }
  0x53   :  { %v331_v3 = vmul.f32 %v282_v37, %v1412_v48  ;;  %v345_v5 = vadd.f32 %v344_v27, %v330_v36  ;;  %v161_v7 = vadd.f32 %v160_v29, %v146_v55  ;;  %v306_v8 = vrot.slane %v1499_v58, %v1467_v31 }
  0x54   :  { %v310_v10 = vrot.slane %v1503_v18, %v1467_v31  ;;  %v314_v28 = vrot.slane %v1523_v24, %v1467_v31  ;;  %v255_v11 = vadd.f32 %v254_v52, %v240_v32  ;;  %v318_v19 = vrot.slane %v1530_v4, %v1467_v31 }
  0x55   :  { %v458_v46 = vrot.slane %v1391_v40, %v1476_v34  ;;  %v462_v36 = vrot.slane %v1394_v41, %v1476_v34  ;;  %v322_v37 = vrot.slane %v1537_v26, %v1467_v31  ;;  %v332_v27 = vmul.f32 %v286_v53, %v1423_v54 }
  0x56   :  { %v333_v29 = vmul.f32 %v290_v56, %v1435_v62  ;;  %v334_v52 = vmul.f32 %v294_v63, %v1446_v6  ;;  %v1646_v32 = vmul.f32 %v298_v1, %v1458_v13  ;;  %v346_v21 = vadd.f32 %v345_v5, %v331_v3 }
  0x57   :  { %v466_v42 = vrot.slane %v1400_v43, %v1476_v34  ;;  %v162_v39 = vadd.f32 %v161_v7, %v147_v12  ;;  %v1651_v33 = vmul.f32 %v302_v2, %v1486_v47  ;;  %v1654_v38 = vmul.f32 %v306_v8, %v1499_v58 }
  0x58   :  { %v1657_v53 = vmul.f32 %v310_v10, %v1503_v18  ;;  %v256_v56 = vadd.f32 %v255_v11, %v241_v25  ;;  %v470_v63 = vrot.slane %v1403_v44, %v1476_v34  ;;  %v519_v1 = vmul.f32 %v458_v46, %v1391_v40 }
  0x59   :  { %v520_v3 = vmul.f32 %v462_v36, %v1394_v41  ;;  %v1664_v5 = vmul.f32 %v314_v28, %v1523_v24  ;;  %v1667_v12 = vmul.f32 %v318_v19, %v1530_v4  ;;  %v1670_v2 = vmul.f32 %v322_v37, %v1537_v26 }
  0x5a   :  { %v362_v7 = vrot.slane %v1391_v40, %v1473_v15  ;;  %v347_v25 = vadd.f32 %v346_v21, %v332_v27  ;;  %v366_v8 = vrot.slane %v1394_v41, %v1473_v15  ;;  %v474_v46 = vrot.slane %v1412_v48, %v1476_v34 }
  0x5b   :  { %2095 = vst [vmem:[#allocation23_spill] sm:$0xff] %v1670_v2  ;;  %v521_v10 = vmul.f32 %v466_v42, %v1400_v43  ;;  %v163_v28 = vadd.f32 %v162_v39, %v148_v14  ;;  %v370_v11 = vrot.slane %v1400_v43, %v1473_v15  ;;  %v374_v19 = vrot.slane %v1403_v44, %v1473_v15 }
  0x5c   :  { %v378_v36 = vrot.slane %v1412_v48, %v1473_v15  ;;  %v257_v37 = vadd.f32 %v256_v56, %v242_v49  ;;  %v382_v21 = vrot.slane %v1423_v54, %v1473_v15  ;;  %v522_v27 = vmul.f32 %v470_v63, %v1403_v44 }
  0x5d   :  { %v535_v55 = vadd.f32 %v520_v3, %v519_v1  ;;  %v386_v42 = vrot.slane %v1435_v62, %v1473_v15  ;;  %v390_v39 = vrot.slane %v1446_v6, %v1473_v15  ;;  %v423_v14 = vmul.f32 %v362_v7, %v1391_v40 }
  0x5e   :  { %v478_v2 = vrot.slane %v1423_v54, %v1476_v34  ;;  %v348_v23 = vadd.f32 %v347_v25, %v333_v29  ;;  %v424_v49 = vmul.f32 %v366_v8, %v1394_v41  ;;  %v523_v56 = vmul.f32 %v474_v46, %v1412_v48 }
  0x5f   :  { %v536_v30 = vadd.f32 %v535_v55, %v521_v10  ;;  %v164_v63 = vadd.f32 %v163_v28, %v1590_v17  ;;  %v394_v1 = vrot.slane %v1458_v13, %v1473_v15  ;;  %v554_v3 = vrot.slane %v1391_v40, %v1479_v45 }
  0x60   :  { %v558_v7 = vrot.slane %v1394_v41, %v1479_v45  ;;  %v258_v22 = vadd.f32 %v257_v37, %v1604_v50  ;;  %v425_v17 = vmul.f32 %v370_v11, %v1400_v43  ;;  %v482_v8 = vrot.slane %v1435_v62, %v1476_v34 }
  0x61   :  { %v537_v55 = vadd.f32 %v536_v30, %v522_v27  ;;  %v524_v46 = vmul.f32 %v478_v2, %v1423_v54  ;;  %v562_v10 = vrot.slane %v1400_v43, %v1479_v45  ;;  %v349_v28 = vadd.f32 %v348_v23, %v334_v52 }
  0x62   :  { %v426_v50 = vmul.f32 %v374_v19, %v1403_v44  ;;  %v439_v37 = vadd.f32 %v424_v49, %v423_v14  ;;  %v165_v29 = vadd.f32 %v164_v63, %v1595_v20  ;;  %v566_v30 = vrot.slane %v1403_v44, %v1479_v45 }
  0x63   :  { %v538_v60 = vadd.f32 %v537_v55, %v523_v56  ;;  %v615_v11 = vmul.f32 %v554_v3, %v1391_v40  ;;  %v616_v27 = vmul.f32 %v558_v7, %v1394_v41  ;;  %v259_v25 = vadd.f32 %v258_v22, %v1607_v35 }
  0x64   :  { %v427_v2 = vmul.f32 %v378_v36, %v1412_v48  ;;  %v428_v31 = vmul.f32 %v382_v21, %v1423_v54  ;;  %v486_v23 = vrot.slane %v1446_v6, %v1476_v34  ;;  %v525_v52 = vmul.f32 %v482_v8, %v1435_v62 }
  0x65   :  { %v539_v19 = vadd.f32 %v538_v60, %v524_v46  ;;  %v570_v20 = vrot.slane %v1412_v48, %v1479_v45  ;;  %v617_v14 = vmul.f32 %v562_v10, %v1400_v43  ;;  %v350_v49 = vadd.f32 %v349_v28, %v1646_v32 }
  0x66   :  { %v1732_v56 = vmul.f32 %v386_v42, %v1435_v62  ;;  %v1735_v35 = vmul.f32 %v390_v39, %v1446_v6  ;;  %v440_v22 = vadd.f32 %v439_v37, %v425_v17  ;;  %v1738_v36 = vmul.f32 %v394_v1, %v1458_v13 }
  0x67   :  { %v574_v60 = vrot.slane %v1423_v54, %v1479_v45  ;;  %v618_v21 = vmul.f32 %v566_v30, %v1403_v44  ;;  %v631_v63 = vadd.f32 %v616_v27, %v615_v11  ;;  %v1743_v3 = vmul.f32 0.06666667, %v165_v29 }
  0x68   :  { %v1746_v32 = vadd.f32 %v259_v25, %v1610_v51  ;;  %v490_v42 = vrot.slane %v1458_v13, %v1476_v34  ;;  %v526_v39 = vmul.f32 %v486_v23, %v1446_v6  ;;  %v540_v7 = vadd.f32 %v539_v19, %v525_v52 }
  0x69   :  { %v578_v1 = vrot.slane %v1435_v62, %v1479_v45  ;;  %v619_v55 = vmul.f32 %v570_v20, %v1412_v48  ;;  %v632_v17 = vadd.f32 %v631_v63, %v617_v14  ;;  %v351_v8 = vadd.f32 %v350_v49, %v1651_v33 }
  0x6a   :  { %v441_v46 = vadd.f32 %v440_v22, %v426_v50  ;;  %v494_v29 = vrot.slane %v1486_v47, %v1476_v34  ;;  %v582_v51 = vrot.slane %v1446_v6, %v1479_v45  ;;  %v620_v25 = vmul.f32 %v574_v60, %v1423_v54 }
  0x6b   :  { %v633_v10 = vadd.f32 %v632_v17, %v618_v21  ;;  %v650_v28 = vrot.slane %v1391_v40, %v1506_v59  ;;  %v654_v37 = vrot.slane %v1394_v41, %v1506_v59  ;;  %v498_v30 = vrot.slane %v1499_v58, %v1476_v34 }
  0x6c   :  { %v502_v33 = vrot.slane %v1503_v18, %v1476_v34  ;;  %v527_v50 = vmul.f32 %v490_v42, %v1458_v13  ;;  %v586_v11 = vrot.slane %v1458_v13, %v1479_v45  ;;  %v541_v27 = vadd.f32 %v540_v7, %v526_v39 }
  0x6d   :  { %v621_v23 = vmul.f32 %v578_v1, %v1435_v62  ;;  %v634_v52 = vadd.f32 %v633_v10, %v619_v55  ;;  %v658_v19 = vrot.slane %v1400_v43, %v1506_v59  ;;  %v1775_v20 = vadd.f32 %v351_v8, %v1654_v38 }
  0x6e   :  { %v506_v14 = vrot.slane %v1523_v24, %v1476_v34  ;;  %v590_v49 = vrot.slane %v1486_v47, %v1479_v45  ;;  %v622_v22 = vmul.f32 %v582_v51, %v1446_v6  ;;  %v662_v21 = vrot.slane %v1403_v44, %v1506_v59 }
  0x6f   :  { %v635_v60 = vadd.f32 %v634_v52, %v620_v25  ;;  %v711_v63 = vmul.f32 %v650_v28, %v1391_v40  ;;  %v712_v42 = vmul.f32 %v654_v37, %v1394_v41  ;;  %v442_v39 = vadd.f32 %v441_v46, %v427_v2 }
  0x70   :  { %v510_v38 = vrot.slane %v1530_v4, %v1476_v34  ;;  %v528_v7 = vmul.f32 %v494_v29, %v1486_v47  ;;  %v623_v1 = vmul.f32 %v586_v11, %v1458_v13  ;;  %v542_v55 = vadd.f32 %v541_v27, %v527_v50 }
  0x71   :  { %v636_v17 = vadd.f32 %v635_v60, %v621_v23  ;;  %v666_v8 = vrot.slane %v1412_v48, %v1506_v59  ;;  %v713_v51 = vmul.f32 %v658_v19, %v1400_v43  ;;  %v514_v25 = vrot.slane %v1537_v26, %v1476_v34 }
  0x72   :  { %v594_v46 = vrot.slane %v1499_v58, %v1479_v45  ;;  %v624_v29 = vmul.f32 %v590_v49, %v1486_v47  ;;  %v670_v28 = vrot.slane %v1423_v54, %v1506_v59  ;;  %v714_v37 = vmul.f32 %v662_v21, %v1403_v44 }
  0x73   :  { %v637_v10 = vadd.f32 %v636_v17, %v622_v22  ;;  %v727_v50 = vadd.f32 %v712_v42, %v711_v63  ;;  %v1803_v11 = vadd.f32 %v442_v39, %v428_v31  ;;  %v529_v27 = vmul.f32 %v498_v30, %v1499_v58 }
  0x74   :  { %v530_v23 = vmul.f32 %v502_v33, %v1503_v18  ;;  %v674_v52 = vrot.slane %v1435_v62, %v1506_v59  ;;  %v543_v19 = vadd.f32 %v542_v55, %v528_v7  ;;  %v715_v49 = vmul.f32 %v666_v8, %v1412_v48 }
  0x75   :  { %v638_v60 = vadd.f32 %v637_v10, %v623_v1  ;;  %v728_v22 = vadd.f32 %v727_v50, %v713_v51  ;;  %v531_v17 = vmul.f32 %v506_v14, %v1523_v24  ;;  %v532_v2 = vmul.f32 %v510_v38, %v1530_v4 }
  0x76   :  { %v598_v31 = vrot.slane %v1503_v18, %v1479_v45  ;;  %v625_v21 = vmul.f32 %v594_v46, %v1499_v58  ;;  %v678_v33 = vrot.slane %v1446_v6, %v1506_v59  ;;  %v716_v63 = vmul.f32 %v670_v28, %v1423_v54 }
  0x77   :  { %v639_v30 = vadd.f32 %v638_v60, %v624_v29  ;;  %v729_v42 = vadd.f32 %v728_v22, %v714_v37  ;;  %v1819_v39 = vmul.f32 %v514_v25, %v1537_v26  ;;  %v602_v14 = vrot.slane %v1523_v24, %v1479_v45 }
  0x78   :  { %v746_v38 = vrot.slane %v1391_v40, %v1516_v0  ;;  %v750_v7 = vrot.slane %v1394_v41, %v1516_v0  ;;  %v544_v1 = vadd.f32 %v543_v19, %v529_v27  ;;  %v682_v55 = vrot.slane %v1458_v13, %v1506_v59 }
  0x79   :  { %v717_v8 = vmul.f32 %v674_v52, %v1435_v62  ;;  %v730_v51 = vadd.f32 %v729_v42, %v715_v49  ;;  %v606_v25 = vrot.slane %v1530_v4, %v1479_v45  ;;  %v626_v46 = vmul.f32 %v598_v31, %v1503_v18 }
  0x7a   :  { %v640_v29 = vadd.f32 %v639_v30, %v625_v21  ;;  %v754_v10 = vrot.slane %v1400_v43, %v1516_v0  ;;  %v610_v28 = vrot.slane %v1537_v26, %v1479_v45  ;;  %v686_v37 = vrot.slane %v1486_v47, %v1506_v59 }
  0x7b   :  { %v718_v50 = vmul.f32 %v678_v33, %v1446_v6  ;;  %v731_v27 = vadd.f32 %v730_v51, %v716_v63  ;;  %v627_v52 = vmul.f32 %v602_v14, %v1523_v24  ;;  %v758_v19 = vrot.slane %v1403_v44, %v1516_v0 }
  0x7c   :  { %v807_v60 = vmul.f32 %v746_v38, %v1391_v40  ;;  %v808_v49 = vmul.f32 %v750_v7, %v1394_v41  ;;  %v545_v22 = vadd.f32 %v544_v1, %v530_v23  ;;  %v690_v31 = vrot.slane %v1499_v58, %v1506_v59 }
  0x7d   :  { %v719_v21 = vmul.f32 %v682_v55, %v1458_v13  ;;  %v732_v30 = vadd.f32 %v731_v27, %v717_v8  ;;  %v628_v42 = vmul.f32 %v606_v25, %v1530_v4  ;;  %v641_v33 = vadd.f32 %v640_v29, %v626_v46 }
  0x7e   :  { %v762_v63 = vrot.slane %v1412_v48, %v1516_v0  ;;  %v809_v14 = vmul.f32 %v754_v10, %v1400_v43  ;;  %v694_v40 = vrot.slane %v1503_v18, %v1506_v59  ;;  %v698_v41 = vrot.slane %v1523_v24, %v1506_v59 }
  0x7f   :  { %v720_v23 = vmul.f32 %v686_v37, %v1486_v47  ;;  %v733_v38 = vadd.f32 %v732_v30, %v718_v50  ;;  %v766_v7 = vrot.slane %v1423_v54, %v1516_v0  ;;  %v810_v1 = vmul.f32 %v758_v19, %v1403_v44 }
  0x80   :  { %v823_v55 = vadd.f32 %v808_v49, %v807_v60  ;;  %v1862_v8 = vadd.f32 %v1495_v57, %v1743_v3  ;;  %v546_v43 = vadd.f32 %v545_v22, %v531_v17  ;;  %v721_v51 = vmul.f32 %v690_v31, %v1499_v58 }
  0x81   :  { %v734_v25 = vadd.f32 %v733_v38, %v719_v21  ;;  %v770_v46 = vrot.slane %v1435_v62, %v1516_v0  ;;  %v642_v29 = vadd.f32 %v641_v33, %v627_v52  ;;  %v811_v10 = vmul.f32 %v762_v63, %v1412_v48 }
  0x82   :  { %v824_v37 = vadd.f32 %v823_v55, %v809_v14  ;;  %1247 = vrcp.f32 %v1862_v8  ;;  %v614_v44 = vrot.slane %v1541_v9, %v1479_v45  ;;  %v702_v57 = vrot.slane %v1530_v4, %v1506_v59 }
  0x83   :  { %v722_v3 = vmul.f32 %v694_v40, %v1503_v18  ;;  %v735_v17 = vadd.f32 %v734_v25, %v720_v23  ;;  %v629_v50 = vmul.f32 %v610_v28, %v1537_v26  ;;  %v774_v27 = vrot.slane %v1446_v6, %v1516_v0 }
  0x84   :  { %v812_v52 = vmul.f32 %v766_v7, %v1423_v54  ;;  %v825_v48 = vadd.f32 %v824_v37, %v810_v1  ;;  %v547_v19 = vadd.f32 %v546_v43, %v532_v2  ;;  %v706_v60 = vrot.slane %v1537_v26, %v1506_v59 }
  0x85   :  { %v723_v49 = vmul.f32 %v698_v41, %v1523_v24  ;;  %v736_v22 = vadd.f32 %v735_v17, %v721_v51  ;;  %v643_v31 = vadd.f32 %v642_v29, %v628_v42  ;;  %v778_v21 = vrot.slane %v1458_v13, %v1516_v0 }
  0x86   :  { %v813_v30 = vmul.f32 %v770_v46, %v1435_v62  ;;  %v826_v28 = vadd.f32 %v825_v48, %v811_v10  ;;  %v444_v33 = vadd.f32 %v1803_v11, %v1732_v56  ;;  %v710_v54 = vrot.slane %v1541_v9, %v1506_v59 }
  0x87   :  { %v724_v2 = vmul.f32 %v702_v57, %v1530_v4  ;;  %v737_v63 = vadd.f32 %v736_v22, %v722_v3  ;;  %v2096_v14 = vrot.slane %v1541_v9, %v1476_v34  ;;  %v782_v40 = vrot.slane %v1486_v47, %v1516_v0 }
  0x88   :  { %v814_v62 = vmul.f32 %v774_v27, %v1446_v6  ;;  %v827_v41 = vadd.f32 %v826_v28, %v812_v52  ;;  %v548_v23 = vadd.f32 %v547_v19, %v1819_v39  ;;  %v630_v56 = vmul.f32 %v614_v44, %v1541_v9 }
  0x89   :  { %v534_v42 = vmul.f32 %v2096_v14, %v1541_v9  ;;  %v725_v11 = vmul.f32 %v706_v60, %v1537_v26  ;;  %v738_v38 = vadd.f32 %v737_v63, %v723_v49  ;;  %v644_v7 = vadd.f32 %v643_v31, %v629_v50 }
  0x8a   :  { %v786_v1 = vrot.slane %v1499_v58, %v1516_v0  ;;  %v815_v55 = vmul.f32 %v778_v21, %v1458_v13  ;;  %v828_v43 = vadd.f32 %v827_v41, %v813_v30  ;;  %v353_v51 = vadd.f32 %v1775_v20, %v1657_v53 }
  0x8b   :  { %v445_v6 = vadd.f32 %v444_v33, %v1735_v35  ;;  %v726_v25 = vmul.f32 %v710_v54, %v1541_v9  ;;  %v739_v39 = vadd.f32 %v738_v38, %v724_v2  ;;  %v2097_v29 = vrot.slane %v1486_v47, %v1473_v15  ;;  %v2101_v38 = vld [vmem:[#allocation19_spill] sm:$0xff] }
  0x8c   :  { %v1248_v46 = vpop.eup %1247  ;;  %v790_v37 = vrot.slane %v1503_v18, %v1516_v0  ;;  %v816_v13 = vmul.f32 %v782_v40, %v1486_v47  ;;  %v829_v44 = vadd.f32 %v828_v43, %v814_v62  ;;  %v261_v53 = vadd.f32 %v1746_v32, %v1613_v61  ;;  %v2099_v40 = vld [vmem:[#allocation16_spill] sm:$0xff] }
  0x8d   :  { %v432_v10 = vmul.f32 %v2097_v29, %v1486_v47  ;;  %v549_v20 = vadd.f32 %v548_v23, %v534_v42  ;;  %v740_v35 = vadd.f32 %v739_v39, %v725_v11  ;;  %v882_v57 = vmul.f32 %v1248_v46, %v1862_v8  ;;  %v2104_v39 = vld [vmem:[#allocation22_spill] sm:$0xff]  ;;  %v2105_v29 = vld [vmem:[#allocation23_spill] sm:$0xff] }
  0x8e   :  { %v645_v3 = vadd.f32 %v644_v7, %v630_v56  ;;  %v794_v17 = vrot.slane %v1523_v24, %v1516_v0  ;;  %v817_v50 = vmul.f32 %v786_v1, %v1499_v58  ;;  %v830_v27 = vadd.f32 %v829_v44, %v815_v55 }
  0x8f   :  { %v354_v52 = vadd.f32 %v353_v51, %v1664_v5  ;;  %v446_v48 = vadd.f32 %v445_v6, %v1738_v36  ;;  %v741_v47 = vadd.f32 %v740_v35, %v726_v25  ;;  %v883_v19 = vsub.f32 2.0, %v882_v57  ;;  %v2103_v6 = vld [vmem:[#allocation21_spill] sm:$0xff]  ;;  %v2106_v57 = vld [vmem:[#allocation12_spill] sm:$0xff] }
  0x90   :  { %v406_v61 = vrot.slane %v1503_v18, %v1473_v15  ;;  %v798_v32 = vrot.slane %v1530_v4, %v1516_v0  ;;  %v818_v60 = vmul.f32 %v790_v37, %v1503_v18  ;;  %v831_v49 = vadd.f32 %v830_v27, %v816_v13 }
  0x91   :  { %v262_v22 = vmul.f32 0.06666667, %v261_v53  ;;  %v550_v31 = vmul.f32 0.06666667, %v549_v20  ;;  %v802_v21 = vrot.slane %v1537_v26, %v1516_v0  ;;  %v884_v30 = vmul.f32 %v1248_v46, %v883_v19 }
  0x92   :  { %v646_v5 = vmul.f32 0.06666667, %v645_v3  ;;  %v742_v28 = vmul.f32 0.06666667, %v741_v47  ;;  %v819_v36 = vmul.f32 %v794_v17, %v1523_v24  ;;  %v832_v33 = vadd.f32 %v831_v49, %v817_v50  ;;  %v2107_v50 = vld [vmem:[#allocation17_spill] sm:$0xff]  ;;  %v2109_v49 = vld [vmem:[#allocation14_spill] sm:$0xff] }
  0x93   :  { %v355_v54 = vadd.f32 %v354_v52, %v1667_v12  ;;  %v2098_v2 = vrot.slane %v1499_v58, %v1473_v15  ;;  %v447_v14 = vadd.f32 %v446_v48, %v432_v10  ;;  %v885_v42 = vmul.f32 %v884_v30, %v1862_v8 }
  0x94   :  { %v2100_v62 = vrot.slane %v1541_v9, %v2099_v40  ;;  %v806_v23 = vrot.slane %v1541_v9, %v1516_v0  ;;  %v820_v56 = vmul.f32 %v798_v32, %v1530_v4  ;;  %v833_v11 = vadd.f32 %v832_v33, %v818_v60 }
  0x95   :  { %v433_v63 = vmul.f32 %v2098_v2, %v1499_v58  ;;  %v410_v12 = vrot.slane %v1523_v24, %v1473_v15  ;;  %v874_v7 = vadd.f32 %v2101_v38, %v262_v22  ;;  %v2102_v58 = vld [vmem:[#allocation20_spill] sm:$0xff]  ;;  %v886_v55 = vsub.f32 2.0, %v885_v42 }
  0x96   :  { %v342_v41 = vmul.f32 %v2100_v62, %v1541_v9  ;;  %v877_v1 = vadd.f32 %v2102_v58, %v550_v31  ;;  %v821_v43 = vmul.f32 %v802_v21, %v1537_v26  ;;  %v834_v51 = vadd.f32 %v833_v11, %v819_v36 }
  0x97   :  { %v1949_v25 = vadd.f32 %v2103_v6, %v646_v5  ;;  %v1952_v46 = vadd.f32 %v2104_v39, %v742_v28  ;;  %v356_v10 = vadd.f32 %v355_v54, %v2105_v29  ;;  %v434_v37 = vmul.f32 %v406_v61, %v1503_v18  ;;  %v2108_v61 = vld [vmem:[#allocation13_spill] sm:$0xff] }
  0x98   :  { %v448_v13 = vadd.f32 %v447_v14, %v433_v63  ;;  %v1956_v44 = vmul.f32 %v886_v55, %v884_v30  ;;  %v414_v53 = vrot.slane %v1530_v4, %v1473_v15  ;;  %v822_v20 = vmul.f32 %v806_v23, %v1541_v9 }
  0x99   :  { %v835_v35 = vadd.f32 %v834_v51, %v820_v56  ;;  %v872_v3 = vmul.f32 1e-06, %v2106_v57  ;;  %v435_v17 = vmul.f32 %v410_v12, %v1523_v24  ;;  %v1965_v27 = vsub.f32 %v1862_v8, %v2107_v50 }
  0x9a   :  { %v889_v52 = vmul.f32 %v1956_v44, %v874_v7  ;;  %v892_v18 = vmul.f32 %v1956_v44, %v877_v1  ;;  %v893_v47 = vmul.f32 %v1956_v44, %v1949_v25  ;;  %v894_v19 = vmul.f32 %v1956_v44, %v1952_v46 }
  0x9b   :  { %v836_v48 = vadd.f32 %v835_v35, %v821_v43  ;;  %v896_v32 = vmul.f32 %v1956_v44, %v2108_v61  ;;  %v357_v60 = vadd.f32 %v356_v10, %v342_v41  ;;  %v449_v24 = vadd.f32 %v448_v13, %v434_v37 }
  0x9c   :  { %v900_v22 = vrot.slane %v889_v52, %v2109_v49  ;;  %v912_v8 = vrot.slane %v892_v18, %v2109_v49  ;;  %v916_v21 = vrot.slane %v893_v47, %v2109_v49  ;;  %v920_v30 = vrot.slane %v894_v19, %v2109_v49 }
  0x9d   :  { %v837_v31 = vadd.f32 %v836_v48, %v822_v20  ;;  %v942_v5 = vrot.slane %v896_v32, %v2109_v49  ;;  %v418_v28 = vrot.slane %v1537_v26, %v1473_v15  ;;  %v2110_v36 = vmov 0.0  }
  0x9e   :  { %v1985_v33 = vsel %vm843_vm7, 1.0, %v2110_v36  ;;  %v925_v54 = vmul.f32 %v900_v22, %v1965_v27  ;;  %v928_v2 = vmul.f32 %v912_v8, %v1965_v27  ;;  %v929_v14 = vmul.f32 %v916_v21, %v1965_v27  ;;  %v2112_v8 = vld [vmem:[#allocation18_spill] sm:$0xff] }
  0x9f   :  { %v838_v63 = vmul.f32 0.06666667, %v837_v31  ;;  %v930_v42 = vmul.f32 %v920_v30, %v1965_v27  ;;  %v943_v62 = vmul.f32 %v942_v5, %v1965_v27  ;;  %v436_v41 = vmul.f32 %v414_v53, %v1530_v4 }
  0xa0   :  { %v450_v23 = vadd.f32 %v449_v24, %v435_v17  ;;  %v932_v56 = vsub.f32 %v874_v7, %v925_v54  ;;  %v1993_v11 = vsub.f32 %v877_v1, %v928_v2  ;;  %v358_v16 = vmul.f32 0.06666667, %v357_v60  ;;  %v2113_v54 = vld [vmem:[#allocation15_spill] sm:$0xff] }
  0xa1   :  { %v867_v12 = vmul.f32 1e-06, %v1985_v33  ;;  %v880_v38 = vadd.f32 %v872_v3, %v838_v63  ;;  %v422_v55 = vrot.slane %v1541_v9, %v1473_v15  ;;  %v437_v43 = vmul.f32 %v418_v28, %v1537_v26  ;;  %v2111_v3 = vld [vmem:[#allocation8_spill] sm:$0xff] }
  0xa2   :  { %1249 = vrcp.f32 %v932_v56  ;;  %v451_v51 = vadd.f32 %v450_v23, %v436_v41  ;;  %v868_v26 = vmul.f32 1e-06, %v2111_v3  ;;  %v937_v19 = vsub.f32 %v1952_v46, %v930_v42 }
  0xa3   :  { %v895_v58 = vmul.f32 %v1956_v44, %v880_v38  ;;  %v875_v6 = vadd.f32 %v867_v12, %v358_v16  ;;  %v438_v1 = vmul.f32 %v422_v55, %v1541_v9  ;;  %v936_v9 = vsub.f32 %v1949_v25, %v929_v14 }
  0xa4   :  { %v452_v39 = vadd.f32 %v451_v51, %v437_v43  ;;  %v944_v60 = vsub.f32 %v2108_v61, %v943_v62  ;;  %v952_v31 = vsub.f32 %v932_v56, %v2112_v8 }
  0xa5   :  { %v924_v4 = vrot.slane %v895_v58, %v2109_v49  ;;  %v890_v29 = vmul.f32 %v1956_v44, %v875_v6 }
  0xa6   :  { %v453_v37 = vadd.f32 %v452_v39, %v438_v1 }
  0xa7   :  { %v931_v7 = vmul.f32 %v924_v4, %v1965_v27  ;;  %v904_v13 = vrot.slane %v890_v29, %v2109_v49 }
  0xa8   :  { %v454_v35 = vmul.f32 0.06666667, %v453_v37 }
  0xa9   :  { %v926_v17 = vmul.f32 %v904_v13, %v1965_v27  ;;  %v938_v32 = vsub.f32 %v880_v38, %v931_v7 }
  0xaa   :  { %v876_v18 = vadd.f32 %v868_v26, %v454_v35 }
  0xab   :  { %v933_v48 = vsub.f32 %v875_v6, %v926_v17 }
  0xac   :  { %v1250_v10 = vpop.eup %1249  ;;  %v891_v22 = vmul.f32 %v1956_v44, %v876_v18 }
  0xad   :  { %v946_v53 = vmul.f32 %v1250_v10, %v932_v56 }
  0xae   :  { %v908_v63 = vrot.slane %v891_v22, %v2109_v49 }
  0xaf   :  { %v947_v20 = vsub.f32 2.0, %v946_v53 }
  0xb0   :  { %v927_v12 = vmul.f32 %v908_v63, %v1965_v27 }
  0xb1   :  { %v948_v50 = vmul.f32 %v1250_v10, %v947_v20 }
  0xb2   :  { %v934_v49 = vsub.f32 %v876_v18, %v927_v12 }
  0xb3   :  { %v949_v52 = vmul.f32 %v948_v50, %v932_v56 }
  0xb5   :  { %v950_v47 = vsub.f32 2.0, %v949_v52 }
  0xb7   :  { %v951_v24 = vmul.f32 %v950_v47, %v948_v50 }
  0xb9   :  { %v953_v21 = vmul.f32 %v951_v24, %v933_v48  ;;  %v956_v30 = vmul.f32 %v951_v24, %v936_v9  ;;  %v957_v5 = vmul.f32 %v951_v24, %v937_v19  ;;  %v958_v28 = vmul.f32 %v951_v24, %v938_v32 }
  0xba   :  { %v959_v36 = vmul.f32 %v951_v24, %v944_v60  ;;  %v954_v43 = vmul.f32 %v951_v24, %v934_v49  ;;  %v955_v51 = vmul.f32 %v951_v24, %v1993_v11 }
  0xbb   :  { %v963_v2 = vrot.slane %v953_v21, %v2113_v54  ;;  %v975_v25 = vrot.slane %v956_v30, %v2113_v54  ;;  %v979_v46 = vrot.slane %v957_v5, %v2113_v54  ;;  %v983_v61 = vrot.slane %v958_v28, %v2113_v54 }
  0xbc   :  { %v999_v14 = vrot.slane %v959_v36, %v2113_v54  ;;  %v967_v4 = vrot.slane %v954_v43, %v2113_v54  ;;  %v971_v7 = vrot.slane %v955_v51, %v2113_v54 }
  0xbd   :  { %v984_v44 = vmul.f32 %v963_v2, %v952_v31  ;;  %v987_v42 = vmul.f32 %v975_v25, %v952_v31  ;;  %v988_v62 = vmul.f32 %v979_v46, %v952_v31  ;;  %v989_v41 = vmul.f32 %v983_v61, %v952_v31 }
  0xbe   :  { %v1000_v23 = vmul.f32 %v999_v14, %v952_v31  ;;  %v985_v29 = vmul.f32 %v967_v4, %v952_v31  ;;  %v986_v10 = vmul.f32 %v971_v7, %v952_v31 }
  0xbf   :  { %v990_v56 = vsub.f32 %v933_v48, %v984_v44  ;;  %v993_v16 = vsub.f32 %v936_v9, %v987_v42  ;;  %v994_v38 = vsub.f32 %v937_v19, %v988_v62  ;;  %v995_v58 = vsub.f32 %v938_v32, %v989_v41 }
  0xc0   :  { %v1001_v55 = vsub.f32 %v944_v60, %v1000_v23  ;;  %v991_v27 = vsub.f32 %v934_v49, %v985_v29  ;;  %v992_v53 = vsub.f32 %v1993_v11, %v986_v10 }
  0xc1   :  { %1251 = vrcp.f32 %v990_v56  ;;  %v1009_v26 = vsub.f32 %v990_v56, %v1985_v33 }
  0xcb   :  { %v1252_v6 = vpop.eup %1251 }
  0xcc   :  { %v1003_v1 = vmul.f32 %v1252_v6, %v990_v56 }
  0xce   :  { %v1004_v39 = vsub.f32 2.0, %v1003_v1 }
  0xd0   :  { %v1005_v37 = vmul.f32 %v1252_v6, %v1004_v39 }
  0xd2   :  { %v1006_v13 = vmul.f32 %v1005_v37, %v990_v56 }
  0xd4   :  { %v1007_v20 = vsub.f32 2.0, %v1006_v13  ;;  %v2114_v13 = vld [vmem:[#allocation9_spill] sm:$0xff] }
  0xd6   :  { %v1008_v35 = vmul.f32 %v1007_v20, %v1005_v37 }
  0xd8   :  { %v1010_v17 = vmul.f32 %v1008_v35, %v991_v27  ;;  %v1011_v50 = vmul.f32 %v1008_v35, %v992_v53  ;;  %v1012_v52 = vmul.f32 %v1008_v35, %v993_v16  ;;  %v1013_v18 = vmul.f32 %v1008_v35, %v994_v38 }
  0xd9   :  { %v1014_v48 = vmul.f32 %v1008_v35, %v995_v58  ;;  %v1015_v9 = vmul.f32 %v1008_v35, %v1001_v55 }
  0xda   :  { %v1019_v47 = vrot.slane %v1010_v17, %v2099_v40  ;;  %v1023_v19 = vrot.slane %v1011_v50, %v2099_v40  ;;  %v1027_v32 = vrot.slane %v1012_v52, %v2099_v40  ;;  %v1031_v60 = vrot.slane %v1013_v18, %v2099_v40 }
  0xdb   :  { %v1035_v11 = vrot.slane %v1014_v48, %v2099_v40  ;;  %v1049_v24 = vrot.slane %v1015_v9, %v2099_v40 }
  0xdc   :  { %v1036_v22 = vmul.f32 %v1019_v47, %v1009_v26  ;;  %v1037_v33 = vmul.f32 %v1023_v19, %v1009_v26  ;;  %v1038_v8 = vmul.f32 %v1027_v32, %v1009_v26  ;;  %v1039_v31 = vmul.f32 %v1031_v60, %v1009_v26 }
  0xdd   :  { %v1040_v21 = vmul.f32 %v1035_v11, %v1009_v26  ;;  %v1050_v30 = vmul.f32 %v1049_v24, %v1009_v26 }
  0xde   :  { %v1041_v5 = vsub.f32 %v991_v27, %v1036_v22  ;;  %v1042_v28 = vsub.f32 %v992_v53, %v1037_v33  ;;  %v1043_v36 = vsub.f32 %v993_v16, %v1038_v8  ;;  %v1044_v54 = vsub.f32 %v994_v38, %v1039_v31 }
  0xdf   :  { %v1045_v2 = vsub.f32 %v995_v58, %v1040_v21  ;;  %v1051_v25 = vsub.f32 %v1001_v55, %v1050_v30 }
  0xe0   :  { %1253 = vrcp.f32 %v1041_v5  ;;  %v1059_v63 = vsub.f32 %v1041_v5, %v2111_v3 }
  0xea   :  { %v1254_v46 = vpop.eup %1253 }
  0xeb   :  { %v1053_v61 = vmul.f32 %v1254_v46, %v1041_v5 }
  0xed   :  { %v1054_v14 = vsub.f32 2.0, %v1053_v61 }
  0xef   :  { %v1055_v44 = vmul.f32 %v1254_v46, %v1054_v14  ;;  %v2115_v46 = vld [vmem:[#allocation10_spill] sm:$0xff] }
  0xf1   :  { %v1056_v40 = vmul.f32 %v1055_v44, %v1041_v5 }
  0xf3   :  { %v1057_v42 = vsub.f32 2.0, %v1056_v40 }
  0xf5   :  { %v1058_v62 = vmul.f32 %v1057_v42, %v1055_v44 }
  0xf7   :  { %v1060_v41 = vmul.f32 %v1058_v62, %v1042_v28  ;;  %v1061_v23 = vmul.f32 %v1058_v62, %v1043_v36  ;;  %v1062_v56 = vmul.f32 %v1058_v62, %v1044_v54  ;;  %v1063_v12 = vmul.f32 %v1058_v62, %v1045_v2 }
  0xf8   :  { %v1064_v49 = vmul.f32 %v1058_v62, %v1051_v25 }
  0xf9   :  { %v1068_v16 = vrot.slane %v1060_v41, %v1473_v15  ;;  %v1072_v38 = vrot.slane %v1061_v23, %v1473_v15  ;;  %v1076_v58 = vrot.slane %v1062_v56, %v1473_v15  ;;  %v1080_v3 = vrot.slane %v1063_v12, %v1473_v15 }
  0xfa   :  { %v1092_v55 = vrot.slane %v1064_v49, %v1473_v15 }
  0xfb   :  { %v1081_v43 = vmul.f32 %v1068_v16, %v1059_v63  ;;  %v1082_v51 = vmul.f32 %v1072_v38, %v1059_v63  ;;  %v1083_v6 = vmul.f32 %v1076_v58, %v1059_v63  ;;  %v1084_v4 = vmul.f32 %v1080_v3, %v1059_v63 }
  0xfc   :  { %v1093_v7 = vmul.f32 %v1092_v55, %v1059_v63 }
  0xfd   :  { %v1085_v1 = vsub.f32 %v1042_v28, %v1081_v43  ;;  %v1086_v39 = vsub.f32 %v1043_v36, %v1082_v51  ;;  %v1087_v29 = vsub.f32 %v1044_v54, %v1083_v6  ;;  %v1088_v10 = vsub.f32 %v1045_v2, %v1084_v4  ;;  %v2116_v4 = vld [vmem:[#allocation11_spill] sm:$0xff] }
  0xfe   :  { %v1094_v37 = vsub.f32 %v1051_v25, %v1093_v7 }
  0xff   :  { %1255 = vrcp.f32 %v1085_v1  ;;  %v1102_v27 = vsub.f32 %v1085_v1, %v2114_v13 }
 0x109   :  { %v1256_v53 = vpop.eup %1255 }
 0x10a   :  { %v1096_v20 = vmul.f32 %v1256_v53, %v1085_v1 }
 0x10c   :  { %v1097_v35 = vsub.f32 2.0, %v1096_v20 }
 0x10e   :  { %v1098_v26 = vmul.f32 %v1256_v53, %v1097_v35 }
 0x110   :  { %v1099_v17 = vmul.f32 %v1098_v26, %v1085_v1 }
 0x112   :  { %v1100_v50 = vsub.f32 2.0, %v1099_v17 }
 0x114   :  { %v1101_v15 = vmul.f32 %v1100_v50, %v1098_v26 }
 0x116   :  { %v1103_v52 = vmul.f32 %v1101_v15, %v1086_v39  ;;  %v1104_v18 = vmul.f32 %v1101_v15, %v1087_v29  ;;  %v1105_v48 = vmul.f32 %v1101_v15, %v1088_v10  ;;  %v1106_v9 = vmul.f32 %v1101_v15, %v1094_v37 }
 0x118   :  { %v1110_v47 = vrot.slane %v1103_v52, %v1476_v34  ;;  %v1114_v19 = vrot.slane %v1104_v18, %v1476_v34  ;;  %v1118_v32 = vrot.slane %v1105_v48, %v1476_v34  ;;  %v1128_v60 = vrot.slane %v1106_v9, %v1476_v34 }
 0x11a   :  { %v1119_v11 = vmul.f32 %v1110_v47, %v1102_v27  ;;  %v1120_v24 = vmul.f32 %v1114_v19, %v1102_v27  ;;  %v1121_v22 = vmul.f32 %v1118_v32, %v1102_v27  ;;  %v1129_v33 = vmul.f32 %v1128_v60, %v1102_v27 }
 0x11c   :  { %v1122_v8 = vsub.f32 %v1086_v39, %v1119_v11  ;;  %v1123_v31 = vsub.f32 %v1087_v29, %v1120_v24  ;;  %v1124_v21 = vsub.f32 %v1088_v10, %v1121_v22  ;;  %v1130_v30 = vsub.f32 %v1094_v37, %v1129_v33 }
 0x11e   :  { %1257 = vrcp.f32 %v1122_v8  ;;  %v1138_v61 = vsub.f32 %v1122_v8, %v2115_v46 }
 0x128   :  { %v1258_v5 = vpop.eup %1257 }
 0x129   :  { %v1132_v28 = vmul.f32 %v1258_v5, %v1122_v8 }
 0x12b   :  { %v1133_v36 = vsub.f32 2.0, %v1132_v28 }
 0x12d   :  { %v1134_v54 = vmul.f32 %v1258_v5, %v1133_v36 }
 0x12f   :  { %v1135_v2 = vmul.f32 %v1134_v54, %v1122_v8 }
 0x131   :  { %v1136_v25 = vsub.f32 2.0, %v1135_v2 }
 0x133   :  { %v1137_v63 = vmul.f32 %v1136_v25, %v1134_v54 }
 0x135   :  { %v1139_v14 = vmul.f32 %v1137_v63, %v1123_v31  ;;  %v1140_v34 = vmul.f32 %v1137_v63, %v1124_v21  ;;  %v1141_v44 = vmul.f32 %v1137_v63, %v1130_v30 }
 0x137   :  { %v1145_v40 = vrot.slane %v1139_v14, %v1479_v45  ;;  %v1149_v42 = vrot.slane %v1140_v34, %v1479_v45  ;;  %v1157_v62 = vrot.slane %v1141_v44, %v1479_v45 }
 0x139   :  { %v1150_v41 = vmul.f32 %v1145_v40, %v1138_v61  ;;  %v1151_v23 = vmul.f32 %v1149_v42, %v1138_v61  ;;  %v1158_v56 = vmul.f32 %v1157_v62, %v1138_v61 }
 0x13b   :  { %v1152_v12 = vsub.f32 %v1123_v31, %v1150_v41  ;;  %v1153_v49 = vsub.f32 %v1124_v21, %v1151_v23  ;;  %v1159_v16 = vsub.f32 %v1130_v30, %v1158_v56 }
 0x13d   :  { %1259 = vrcp.f32 %v1152_v12  ;;  %v1167_v7 = vsub.f32 %v1152_v12, %v2116_v4 }
 0x147   :  { %v1260_v38 = vpop.eup %1259 }
 0x148   :  { %v1161_v58 = vmul.f32 %v1260_v38, %v1152_v12 }
 0x14a   :  { %v1162_v3 = vsub.f32 2.0, %v1161_v58 }
 0x14c   :  { %v1163_v55 = vmul.f32 %v1260_v38, %v1162_v3 }
 0x14e   :  { %v1164_v43 = vmul.f32 %v1163_v55, %v1152_v12 }
 0x150   :  { %v1165_v51 = vsub.f32 2.0, %v1164_v43 }
 0x152   :  { %v1166_v6 = vmul.f32 %v1165_v51, %v1163_v55 }
 0x154   :  { %v1168_v1 = vmul.f32 %v1166_v6, %v1153_v49  ;;  %v1169_v39 = vmul.f32 %v1166_v6, %v1159_v16 }
 0x156   :  { %v1173_v45 = vrot.slane %v1168_v1, %v1506_v59  ;;  %v1179_v29 = vrot.slane %v1169_v39, %v1506_v59 }
 0x158   :  { %v1174_v10 = vmul.f32 %v1173_v45, %v1167_v7  ;;  %v1180_v37 = vmul.f32 %v1179_v29, %v1167_v7 }
 0x15a   :  { %v1175_v13 = vsub.f32 %v1153_v49, %v1174_v10  ;;  %v1181_v27 = vsub.f32 %v1159_v16, %v1180_v37 }
 0x15c   :  { %1261 = vrcp.f32 %v1175_v13  ;;  %v1189_v52 = vsub.f32 %v1175_v13, %v2106_v57 }
 0x166   :  { %v1262_v53 = vpop.eup %1261 }
 0x167   :  { %v1183_v20 = vmul.f32 %v1262_v53, %v1175_v13 }
 0x169   :  { %v1184_v35 = vsub.f32 2.0, %v1183_v20 }
 0x16b   :  { %v1185_v26 = vmul.f32 %v1262_v53, %v1184_v35 }
 0x16d   :  { %v1186_v17 = vmul.f32 %v1185_v26, %v1175_v13 }
 0x16f   :  { %v1187_v50 = vsub.f32 2.0, %v1186_v17 }
 0x171   :  { %v1188_v15 = vmul.f32 %v1187_v50, %v1185_v26 }
 0x173   :  { %v1190_v18 = vmul.f32 %v1188_v15, %v1181_v27 }
 0x175   :  { %v1194_v48 = vrot.slane %v1190_v18, %v1516_v0 }
 0x177   :  { %v1195_v9 = vmul.f32 %v1194_v48, %v1189_v52 }
 0x179   :  { %v1196_v47 = vsub.f32 %v1181_v27, %v1195_v9 }
 0x17b   :  { %v1197_v59 = vmul.f32 10.0, %v1196_v47 }
 0x17d   :  { %v1198_v19 = vrot.slane %v1197_v59, 4 }
 0x17f   :  { %v1199_v32 = vmax.f32 %v1197_v59, %v1198_v19 }
 0x181   :  { %v1200_v60 = vrot.slane %v1199_v32, 2 }
 0x183   :  { %v1201_v11 = vmax.f32 %v1199_v32, %v1200_v60 }
 0x185   :  { %v1202_v24 = vrot.slane %v1201_v11, 1 }
 0x187   :  { %v1203_v22 = vmax.f32 %v1201_v11, %v1202_v24 }
 0x189   :  { %v1204_v33 = vsub.f32 %v1197_v59, %v1203_v22 }
 0x18b   :  { %v1205_v8 = vmul.f32 1.442695, %v1204_v33 }
 0x18d   :  { %1263 = vpow2.f32 %v1205_v8 }
 0x197   :  { %v1264_v31 = vpop.eup %1263 }
 0x198   :  { %v1207_v21 = vrot.slane %v1264_v31, 4 }
 0x19a   :  { %v1208_v30 = vadd.f32 %v1264_v31, %v1207_v21 }
 0x19c   :  { %v1209_v5 = vrot.slane %v1208_v30, 2 }
 0x19e   :  { %v1210_v57 = vadd.f32 %v1209_v5, %v1208_v30 }
 0x1a0   :  { %v1211_v28 = vrot.slane %v1210_v57, 1 }
 0x1a2   :  { %v1212_v36 = vadd.f32 %v1211_v28, %v1210_v57 }
 0x1a4   :  { %1265 = vrcp.f32 %v1212_v36 }
 0x1ae   :  { %v1266_v0 = vpop.eup %1265 }
 0x1af   :  { %v1214_v54 = vmul.f32 %v1266_v0, %v1212_v36 }
 0x1b1   :  { %v1215_v2 = vsub.f32 2.0, %v1214_v54 }
 0x1b3   :  { %v1216_v25 = vmul.f32 %v1266_v0, %v1215_v2 }
 0x1b5   :  { %v1217_v63 = vmul.f32 %v1264_v31, %v1216_v25 }
 0x1b7   :  { %1218 = vst [vmem:[#allocation5] sm:$0xff] %v1217_v63 }
 0x1b8   :  { %1300 = shalt.err (!%p1297_p12)
}
 0x1b9   :  { %s1301_s24 = scalar_lea.hbm %s2063_s1, 128 }
 0x1ba   :  { %p1302_p13 = scmp.ne.s32.totalorder %s2063_s1, %s1301_s24  ;;  %p1305_p0 = scmp.lt.u32.totalorder %s1301_s24, %s2063_s1 }
 0x1bc   :  { %p1307_p1 = pnand %p1305_p0, %p1302_p13 }
 0x1be   :  { %1310 = shalt.err (!%p1307_p1)
}
 0x1bf   :  { %1228 = dma.vmem_to_hbm [thread:$0]  %s1226_s20, 128, %s2063_s1, [#allocation4]  }
 0x1c0   :  { %1313 = dma.done.wait [#allocation4], 128  }
 0x1c1   :  { %1314 = vsyncadd [#allocation4], 4294967168 }
 0x1c2   :  { %1232 = vsyncpa [#allocation3], 1 }
 0x1c3   :  { %1233 = vsyncpa [#allocation4], 1 }

</bundles_post_ra>
